<compile_context>
chip_gen: v7x
topology: tpu7x:2x2x1
jax: 0.10.0
libtpu: 0.0.40
codegen_flags: <defaults>
</compile_context>

<pallas_src>
import functools

import jax
import jax.numpy as jnp
from jax.experimental import pallas as pl
from jax.experimental.pallas import tpu as pltpu

CLAMP_MAX = 21.0


def _conv1x1_pad_clamp_kernel(x_ref, w_ref, b_ref, o_ref, *, pad):
    # x_ref: (N, Cin, H, W)   unpadded input
    # w_ref: (Cout, Cin)      b_ref: (Cout, 1)
    # o_ref: (N, Cout, Ho, Wo) with Ho = H + 2*pad, Wo = W + 2*pad
    n_img, cin, h, w_sz = x_ref.shape
    cout = w_ref.shape[0]
    _, _, ho, wo = o_ref.shape

    b = b_ref[...]                                   # (Cout, 1)
    bmin = jnp.minimum(b, CLAMP_MAX)                 # clamped bias == border value
    # Hoisted out of the image loop (broadcasts are not CSE'd by JAX).
    border = jnp.broadcast_to(bmin[:, :, None], (cout, ho, wo))

    for n in range(n_img):                           # N is tiny (2); static unroll
        # Interior 1x1 conv as exact f32 VPU FMAs (no MXU fill/drain).
        y = b[:, :, None]                            # (Cout, 1, 1)
        for c in range(cin):                         # Cin = 3, static unroll
            wc = w_ref[:, c:c + 1][:, :, None]       # (Cout, 1, 1)
            xc = x_ref[n, c][None, :, :]             # (1, H, W)
            y = y + wc * xc                          # (Cout, H, W)
        y = jnp.minimum(y, CLAMP_MAX)

        # Conv2d padding=4 realized in-kernel: fill with min(bias, 21), then
        # overwrite the interior rectangle.
        o_ref[n] = border.astype(o_ref.dtype)
        o_ref[n, :, pl.ds(pad, h), pl.ds(pad, w_sz)] = y.astype(o_ref.dtype)


def conv1x1_pad_clamp_pallas(x_nchw, w_mat, b_col, *, padding):
    """x_nchw: (N, Cin, H, W) f32, w_mat: (Cout, Cin), b_col: (Cout, 1)
    -> (N, Cout, H+2p, W+2p) f32 (NCHW), fused conv + zero-pad + upper clamp."""
    N, Cin, H, W = x_nchw.shape
    Cout = w_mat.shape[0]
    Ho, Wo = H + 2 * padding, W + 2 * padding

    kernel = functools.partial(_conv1x1_pad_clamp_kernel, pad=padding)
    return pl.pallas_call(
        kernel,
        out_shape=jax.ShapeDtypeStruct((N, Cout, Ho, Wo), jnp.float32),
        grid=(1,),
        in_specs=[
            pl.BlockSpec((N, Cin, H, W), lambda i: (0, 0, 0, 0)),
            pl.BlockSpec((Cout, Cin), lambda i: (0, 0)),
            pl.BlockSpec((Cout, 1), lambda i: (0, 0)),
        ],
        out_specs=pl.BlockSpec((N, Cout, Ho, Wo), lambda i: (0, 0, 0, 0)),
        compiler_params=pltpu.CompilerParams(
            dimension_semantics=("arbitrary",)),
    )(x_nchw, w_mat, b_col)


def test_module_forward(x_nchw, w, b, *, padding=4):
    """Full TestModule forward.
    x_nchw: (N, 3, H, W) f32 -> (N, 13, H+2*padding, W+2*padding) f32 (NCHW)."""
    N, Cin, H, W = x_nchw.shape
    Cout = w.shape[0]                     # torch weight layout (Cout, Cin, 1, 1)
    w_mat = w.reshape(Cout, Cin)
    b_col = b.reshape(Cout, 1)
    return conv1x1_pad_clamp_pallas(x_nchw, w_mat, b_col, padding=padding)


if __name__ == "__main__":
    key = jax.random.PRNGKey(0)
    kx, kw, kb = jax.random.split(key, 3)

    N, Cin, H, W = 2, 3, 16, 16
    Cout, PAD = 13, 4

    x = jax.random.normal(kx, (N, Cin, H, W), dtype=jnp.float32)

    # deterministic Conv2d(3, 13, 1) init (kaiming-uniform-like, fan_in=3)
    bound = 1.0 / (Cin ** 0.5)
    w = jax.random.uniform(kw, (Cout, Cin, 1, 1), minval=-bound, maxval=bound,
                           dtype=jnp.float32)
    b = jax.random.uniform(kb, (Cout,), minval=-bound, maxval=bound,
                           dtype=jnp.float32)

    out = test_module_forward(x, w, b, padding=PAD)
    out = jax.block_until_ready(out)

    # plain-JAX reference: interior = clamped conv, border = clamped bias
    Ho, Wo = H + 2 * PAD, W + 2 * PAD
    core = jnp.einsum("oc,nchw->nohw", w.reshape(Cout, Cin), x,
                      precision=jax.lax.Precision.HIGHEST) + b.reshape(1, Cout, 1, 1)
    ref = jnp.broadcast_to(jnp.minimum(b, CLAMP_MAX).reshape(1, Cout, 1, 1),
                           (N, Cout, Ho, Wo))
    ref = ref.at[:, :, PAD:PAD + H, PAD:PAD + W].set(jnp.minimum(core, CLAMP_MAX))

    assert out.shape == (N, Cout, Ho, Wo)
    assert jnp.allclose(out, ref, atol=1e-4, rtol=1e-4), "mismatch vs reference"

    print("KERNEL_OK")
</pallas_src>

<mosaic_0001>
module attributes {stable_mosaic.version = 11 : i64} {
  func.func @_conv1x1_pad_clamp_kernel(%arg0: i32, %arg1: memref<2x3x16x16xf32, #tpu.memory_space<vmem>>, %arg2: memref<13x3xf32, #tpu.memory_space<vmem>>, %arg3: memref<13x1xf32, #tpu.memory_space<vmem>>, %arg4: memref<2x13x24x24xf32, #tpu.memory_space<vmem>>) attributes {dimension_semantics = [#tpu.dimension_semantics<arbitrary>], iteration_bounds = array<i64: 1>, scalar_prefetch = 0 : i64, scratch_operands = 0 : i64, tpu.core_type = #tpu.core_type<tc>, window_params = [{pipeline_mode = #tpu.pipeline_mode<synchronous>, transform_indices = @transform_0, window_bounds = array<i64: 2, 3, 16, 16>}, {pipeline_mode = #tpu.pipeline_mode<synchronous>, transform_indices = @transform_1, window_bounds = array<i64: 13, 3>}, {pipeline_mode = #tpu.pipeline_mode<synchronous>, transform_indices = @transform_2, window_bounds = array<i64: 13, 1>}, {pipeline_mode = #tpu.pipeline_mode<synchronous>, transform_indices = @transform_3, window_bounds = array<i64: 2, 13, 24, 24>}]} {
    %c0 = arith.constant 0 : index
    %c0_0 = arith.constant 0 : index
    %0 = vector.load %arg3[%c0, %c0_0] : memref<13x1xf32, #tpu.memory_space<vmem>>, vector<13x1xf32>
    %cst = arith.constant 2.100000e+01 : f32
    %1 = vector.broadcast %cst : f32 to vector<13x1xf32>
    %2 = arith.minimumf %0, %1 : vector<13x1xf32>
    %3 = vector.shape_cast %2 : vector<13x1xf32> to vector<13x1x1xf32>
    %4 = vector.shape_cast %3 : vector<13x1x1xf32> to vector<13x1x1xf32>
    %5 = vector.broadcast %4 : vector<13x1x1xf32> to vector<13x24x24xf32>
    %6 = vector.shape_cast %0 : vector<13x1xf32> to vector<13x1x1xf32>
    %c0_1 = arith.constant 0 : index
    %c0_2 = arith.constant 0 : index
    %7 = vector.load %arg2[%c0_1, %c0_2] : memref<13x3xf32, #tpu.memory_space<vmem>>, vector<13x1xf32>
    %8 = vector.shape_cast %7 : vector<13x1xf32> to vector<13x1x1xf32>
    %c0_3 = arith.constant 0 : index
    %c0_4 = arith.constant 0 : index
    %c0_5 = arith.constant 0 : index
    %c0_6 = arith.constant 0 : index
    %9 = vector.load %arg1[%c0_3, %c0_4, %c0_5, %c0_6] : memref<2x3x16x16xf32, #tpu.memory_space<vmem>>, vector<1x1x16x16xf32>
    %10 = vector.shape_cast %9 : vector<1x1x16x16xf32> to vector<16x16xf32>
    %11 = vector.shape_cast %10 : vector<16x16xf32> to vector<1x16x16xf32>
    %12 = vector.broadcast %8 : vector<13x1x1xf32> to vector<13x16x16xf32>
    %13 = vector.broadcast %11 : vector<1x16x16xf32> to vector<13x16x16xf32>
    %14 = arith.mulf %12, %13 : vector<13x16x16xf32>
    %15 = vector.broadcast %6 : vector<13x1x1xf32> to vector<13x16x16xf32>
    %16 = arith.addf %15, %14 : vector<13x16x16xf32>
    %c0_7 = arith.constant 0 : index
    %c1 = arith.constant 1 : index
    %17 = vector.load %arg2[%c0_7, %c1] : memref<13x3xf32, #tpu.memory_space<vmem>>, vector<13x1xf32>
    %18 = vector.shape_cast %17 : vector<13x1xf32> to vector<13x1x1xf32>
    %c0_8 = arith.constant 0 : index
    %c1_9 = arith.constant 1 : index
    %c0_10 = arith.constant 0 : index
    %c0_11 = arith.constant 0 : index
    %19 = vector.load %arg1[%c0_8, %c1_9, %c0_10, %c0_11] : memref<2x3x16x16xf32, #tpu.memory_space<vmem>>, vector<1x1x16x16xf32>
    %20 = vector.shape_cast %19 : vector<1x1x16x16xf32> to vector<16x16xf32>
    %21 = vector.shape_cast %20 : vector<16x16xf32> to vector<1x16x16xf32>
    %22 = vector.broadcast %18 : vector<13x1x1xf32> to vector<13x16x16xf32>
    %23 = vector.broadcast %21 : vector<1x16x16xf32> to vector<13x16x16xf32>
    %24 = arith.mulf %22, %23 : vector<13x16x16xf32>
    %25 = arith.addf %16, %24 : vector<13x16x16xf32>
    %c0_12 = arith.constant 0 : index
    %c2 = arith.constant 2 : index
    %26 = vector.load %arg2[%c0_12, %c2] : memref<13x3xf32, #tpu.memory_space<vmem>>, vector<13x1xf32>
    %27 = vector.shape_cast %26 : vector<13x1xf32> to vector<13x1x1xf32>
    %c0_13 = arith.constant 0 : index
    %c2_14 = arith.constant 2 : index
    %c0_15 = arith.constant 0 : index
    %c0_16 = arith.constant 0 : index
    %28 = vector.load %arg1[%c0_13, %c2_14, %c0_15, %c0_16] : memref<2x3x16x16xf32, #tpu.memory_space<vmem>>, vector<1x1x16x16xf32>
    %29 = vector.shape_cast %28 : vector<1x1x16x16xf32> to vector<16x16xf32>
    %30 = vector.shape_cast %29 : vector<16x16xf32> to vector<1x16x16xf32>
    %31 = vector.broadcast %27 : vector<13x1x1xf32> to vector<13x16x16xf32>
    %32 = vector.broadcast %30 : vector<1x16x16xf32> to vector<13x16x16xf32>
    %33 = arith.mulf %31, %32 : vector<13x16x16xf32>
    %34 = arith.addf %25, %33 : vector<13x16x16xf32>
    %cst_17 = arith.constant 2.100000e+01 : f32
    %35 = vector.broadcast %cst_17 : f32 to vector<13x16x16xf32>
    %36 = arith.minimumf %34, %35 : vector<13x16x16xf32>
    %c0_18 = arith.constant 0 : index
    %c0_19 = arith.constant 0 : index
    %c0_20 = arith.constant 0 : index
    %c0_21 = arith.constant 0 : index
    %37 = vector.load %arg4[%c0_18, %c0_19, %c0_20, %c0_21] : memref<2x13x24x24xf32, #tpu.memory_space<vmem>>, vector<1x13x24x24xf32>
    %38 = vector.shape_cast %37 : vector<1x13x24x24xf32> to vector<13x24x24xf32>
    %39 = vector.shape_cast %5 : vector<13x24x24xf32> to vector<1x13x24x24xf32>
    tpu.vector_store %arg4[%c0_18, %c0_19, %c0_20, %c0_21], %39 {strides = array<i32>} : memref<2x13x24x24xf32, #tpu.memory_space<vmem>>, vector<1x13x24x24xf32>,
    %c0_22 = arith.constant 0 : index
    %c0_23 = arith.constant 0 : index
    %c4 = arith.constant 4 : index
    %c4_24 = arith.constant 4 : index
    %40 = vector.load %arg4[%c0_22, %c0_23, %c4, %c4_24] : memref<2x13x24x24xf32, #tpu.memory_space<vmem>>, vector<1x13x16x16xf32>
    %41 = vector.shape_cast %40 : vector<1x13x16x16xf32> to vector<13x16x16xf32>
    %42 = vector.shape_cast %36 : vector<13x16x16xf32> to vector<1x13x16x16xf32>
    tpu.vector_store %arg4[%c0_22, %c0_23, %c4, %c4_24], %42 {strides = array<i32>} : memref<2x13x24x24xf32, #tpu.memory_space<vmem>>, vector<1x13x16x16xf32>,
    %43 = vector.shape_cast %0 : vector<13x1xf32> to vector<13x1x1xf32>
    %c0_25 = arith.constant 0 : index
    %c0_26 = arith.constant 0 : index
    %44 = vector.load %arg2[%c0_25, %c0_26] : memref<13x3xf32, #tpu.memory_space<vmem>>, vector<13x1xf32>
    %45 = vector.shape_cast %44 : vector<13x1xf32> to vector<13x1x1xf32>
    %c1_27 = arith.constant 1 : index
    %c0_28 = arith.constant 0 : index
    %c0_29 = arith.constant 0 : index
    %c0_30 = arith.constant 0 : index
    %46 = vector.load %arg1[%c1_27, %c0_28, %c0_29, %c0_30] : memref<2x3x16x16xf32, #tpu.memory_space<vmem>>, vector<1x1x16x16xf32>
    %47 = vector.shape_cast %46 : vector<1x1x16x16xf32> to vector<16x16xf32>
    %48 = vector.shape_cast %47 : vector<16x16xf32> to vector<1x16x16xf32>
    %49 = vector.broadcast %45 : vector<13x1x1xf32> to vector<13x16x16xf32>
    %50 = vector.broadcast %48 : vector<1x16x16xf32> to vector<13x16x16xf32>
    %51 = arith.mulf %49, %50 : vector<13x16x16xf32>
    %52 = vector.broadcast %43 : vector<13x1x1xf32> to vector<13x16x16xf32>
    %53 = arith.addf %52, %51 : vector<13x16x16xf32>
    %c0_31 = arith.constant 0 : index
    %c1_32 = arith.constant 1 : index
    %54 = vector.load %arg2[%c0_31, %c1_32] : memref<13x3xf32, #tpu.memory_space<vmem>>, vector<13x1xf32>
    %55 = vector.shape_cast %54 : vector<13x1xf32> to vector<13x1x1xf32>
    %c1_33 = arith.constant 1 : index
    %c1_34 = arith.constant 1 : index
    %c0_35 = arith.constant 0 : index
    %c0_36 = arith.constant 0 : index
    %56 = vector.load %arg1[%c1_33, %c1_34, %c0_35, %c0_36] : memref<2x3x16x16xf32, #tpu.memory_space<vmem>>, vector<1x1x16x16xf32>
    %57 = vector.shape_cast %56 : vector<1x1x16x16xf32> to vector<16x16xf32>
    %58 = vector.shape_cast %57 : vector<16x16xf32> to vector<1x16x16xf32>
    %59 = vector.broadcast %55 : vector<13x1x1xf32> to vector<13x16x16xf32>
    %60 = vector.broadcast %58 : vector<1x16x16xf32> to vector<13x16x16xf32>
    %61 = arith.mulf %59, %60 : vector<13x16x16xf32>
    %62 = arith.addf %53, %61 : vector<13x16x16xf32>
    %c0_37 = arith.constant 0 : index
    %c2_38 = arith.constant 2 : index
    %63 = vector.load %arg2[%c0_37, %c2_38] : memref<13x3xf32, #tpu.memory_space<vmem>>, vector<13x1xf32>
    %64 = vector.shape_cast %63 : vector<13x1xf32> to vector<13x1x1xf32>
    %c1_39 = arith.constant 1 : index
    %c2_40 = arith.constant 2 : index
    %c0_41 = arith.constant 0 : index
    %c0_42 = arith.constant 0 : index
    %65 = vector.load %arg1[%c1_39, %c2_40, %c0_41, %c0_42] : memref<2x3x16x16xf32, #tpu.memory_space<vmem>>, vector<1x1x16x16xf32>
    %66 = vector.shape_cast %65 : vector<1x1x16x16xf32> to vector<16x16xf32>
    %67 = vector.shape_cast %66 : vector<16x16xf32> to vector<1x16x16xf32>
    %68 = vector.broadcast %64 : vector<13x1x1xf32> to vector<13x16x16xf32>
    %69 = vector.broadcast %67 : vector<1x16x16xf32> to vector<13x16x16xf32>
    %70 = arith.mulf %68, %69 : vector<13x16x16xf32>
    %71 = arith.addf %62, %70 : vector<13x16x16xf32>
    %cst_43 = arith.constant 2.100000e+01 : f32
    %72 = vector.broadcast %cst_43 : f32 to vector<13x16x16xf32>
    %73 = arith.minimumf %71, %72 : vector<13x16x16xf32>
    %c1_44 = arith.constant 1 : index
    %c0_45 = arith.constant 0 : index
    %c0_46 = arith.constant 0 : index
    %c0_47 = arith.constant 0 : index
    %74 = vector.load %arg4[%c1_44, %c0_45, %c0_46, %c0_47] : memref<2x13x24x24xf32, #tpu.memory_space<vmem>>, vector<1x13x24x24xf32>
    %75 = vector.shape_cast %74 : vector<1x13x24x24xf32> to vector<13x24x24xf32>
    %76 = vector.shape_cast %5 : vector<13x24x24xf32> to vector<1x13x24x24xf32>
    tpu.vector_store %arg4[%c1_44, %c0_45, %c0_46, %c0_47], %76 {strides = array<i32>} : memref<2x13x24x24xf32, #tpu.memory_space<vmem>>, vector<1x13x24x24xf32>,
    %c1_48 = arith.constant 1 : index
    %c0_49 = arith.constant 0 : index
    %c4_50 = arith.constant 4 : index
    %c4_51 = arith.constant 4 : index
    %77 = vector.load %arg4[%c1_48, %c0_49, %c4_50, %c4_51] : memref<2x13x24x24xf32, #tpu.memory_space<vmem>>, vector<1x13x16x16xf32>
    %78 = vector.shape_cast %77 : vector<1x13x16x16xf32> to vector<13x16x16xf32>
    %79 = vector.shape_cast %73 : vector<13x16x16xf32> to vector<1x13x16x16xf32>
    tpu.vector_store %arg4[%c1_48, %c0_49, %c4_50, %c4_51], %79 {strides = array<i32>} : memref<2x13x24x24xf32, #tpu.memory_space<vmem>>, vector<1x13x16x16xf32>,
    return
  }
  func.func @transform_0(%arg0: i32) -> (i32, i32, i32, i32) {
    %c0_i32 = arith.constant 0 : i32
    %c0_i32_0 = arith.constant 0 : i32
    %c0_i32_1 = arith.constant 0 : i32
    %c0_i32_2 = arith.constant 0 : i32
    %c0_i32_3 = arith.constant 0 : i32
    return %c0_i32, %c0_i32_0, %c0_i32_1, %c0_i32_2 : i32, i32, i32, i32
  }
  func.func @transform_1(%arg0: i32) -> (i32, i32) {
    %c0_i32 = arith.constant 0 : i32
    %c0_i32_0 = arith.constant 0 : i32
    %c0_i32_1 = arith.constant 0 : i32
    return %c0_i32, %c0_i32_0 : i32, i32
  }
  func.func @transform_2(%arg0: i32) -> (i32, i32) {
    %c0_i32 = arith.constant 0 : i32
    %c0_i32_0 = arith.constant 0 : i32
    %c0_i32_1 = arith.constant 0 : i32
    return %c0_i32, %c0_i32_0 : i32, i32
  }
  func.func @transform_3(%arg0: i32) -> (i32, i32, i32, i32) {
    %c0_i32 = arith.constant 0 : i32
    %c0_i32_0 = arith.constant 0 : i32
    %c0_i32_1 = arith.constant 0 : i32
    %c0_i32_2 = arith.constant 0 : i32
    %c0_i32_3 = arith.constant 0 : i32
    return %c0_i32, %c0_i32_0, %c0_i32_1, %c0_i32_2 : i32, i32, i32, i32
  }
}

</mosaic_0001>

<bundles_post_ra>
// kernel: tpu_custom_call.1
= control target key start
LH: loop header
LB: loop body
LE: loop exit
PB: predicated region body
PF: predicated region fallthrough
CT: control target
= control target key end

     0   :  { %8 = vsyncpa [#allocation3], 0  ;;  %s3385_s0 = inlined_call_operand.hbm [shape: f32[2,3,16,16], index: 0, kind: input, shape index: {}]   ;;  %s3386_s1 = inlined_call_operand.vmem [shape: f32[13,3], index: 1, kind: input, shape index: {}]   ;;  %s3387_s2 = inlined_call_operand.vmem [shape: f32[13,1], index: 2, kind: input, shape index: {}]   ;;  %s3388_s3 = inlined_call_operand.hbm [shape: f32[2,13,24,24], index: 3, kind: output, shape index: {}]  }
   0x1   :  { %9 = vsyncpa [#allocation4], 0  ;;  %s2412_s12 = smov [#allocation2]   ;;  %s2364_s16 = scalar_lea.hbm %s3385_s0, 1536 }
   0x2   :  { %s15_s13 = sshll.u32 %s2412_s12, 4  ;;  %p2365_p0 = scmp.ne.s32.totalorder %s3385_s0, %s2364_s16  ;;  %s16_s13 = int_to_ptr.vmem [resolvable:$true] %s15_s13 }
   0x3   :  { %p2368_p1 = scmp.lt.u32.totalorder %s2364_s16, %s3385_s0 }
   0x5   :  { %p2370_p2 = pnand %p2368_p1, %p2365_p0 }
   0x7   :  { %2373 = shalt.err (!%p2370_p2)
}
   0x8   :  { %s2374_s21 = scalar_lea.vmem %s16_s13, 1536  ;;  %p2379_p4 = scmp.lt.s32.totalorder %s16_s13, %s16_s13 }
   0x9   :  { %p2375_p3 = scmp.ne.s32.totalorder %s16_s13, %s2374_s21  ;;  %p2380_p5 = scmp.lt.s32.totalorder %s2374_s21, %s2374_s21 }
   0xb   :  { %p2381_p6 = por %p2380_p5, %p2379_p4 }
   0xd   :  { %p2382_p7 = pnand %p2381_p6, %p2375_p3 }
   0xf   :  { %2385 = shalt.err (!%p2382_p7)
}
  0x10   :  { %s2413_s22 = smov 128   ;;  %s2414_s23 = smov 8  }
  0x11   :  { %21 = dma.hbm_to_vmem [thread:$0]  %s3385_s0, 1536, %s16_s13, [#allocation3], %s2413_s22, %s2413_s22, %s2414_s23  }
  0x12   :  { %2408 = dma.done.wait [#allocation3], 1536  }
  0x13   :  { %2409 = vsyncadd [#allocation3], 4294965760  ;;  %v39_v0 = vlaneseq  ;;  %v3391_v1 = vmov 1   ;;  %v2416_v2 = vmov 1966171168   ;;  %v2417_v4 = vmov 0  }
  0x14   :  { %2346 = vset.pattern.permute.xlu0 %v3391_v1  ;;  %v37_v3 = vunpack.c.l.s4 %v2416_v2  ;;  %2345 = vset.pattern.permute.xlu1 %v2417_v4  ;;  %v477_v8 = vld [vmem:[%s3386_s1] sm:$0xff]  ;;  %v2466_v9 = vld [vmem:[%s3386_s1 + $0x8] sm:$0x1f]  ;;  %v3389_v48 = vmov 2   ;;  %vm1199_vm0 = vcmask 195584   ;;  %vm1343_vm1 = vcmask 162848  }
  0x15   :  { %v40_v5 = vshrl.u32 %v39_v0, 7  ;;  %v481_v12 = vcombine.high %v477_v8, %v477_v8  ;;  %v2484_v18 = vld [vmem:[%s3386_s1 + $0x8] sm:$0x1f]  ;;  %v2517_v36 = vld [vmem:[%s3387_s2] sm:$0xff] }
  0x16   :  { %v38_v6 = vunpack.c.0.s8 %v37_v3  ;;  %v35_v43 = vcombine.high %v2517_v36, %v2517_v36  ;;  %v2537_v47 = vld [vmem:[%s3386_s1 + $0x8] sm:$0x1f] }
  0x17   :  { %v2468_v10 = vsub.s32 0, %v40_v5  ;;  %v2551_v52 = vld [vmem:[%s3387_s2 + $0x8] sm:$0x1f]  ;;  %s2419_s2 = smov 4  }
  0x18   :  { %v2458_v7 = vsub.s32 %v38_v6, %v40_v5  ;;  %v84_v60 = vcombine.high %v2551_v52, %v2551_v52 }
  0x19   :  { %3401 = vst [vmem:[#allocation8_spill] sm:$0xff] %v2468_v10 }
  0x1a   :  { %v488_v11 = vrot.slane %v477_v8, %v2458_v7  ;;  %v2473_v13 = vrot.slane %v2466_v9, %v2458_v7  ;;  %v2477_v15 = vrot.slane %v481_v12, %v2458_v7  ;;  %v2503_v26 = vrot.slane %v2484_v18, %v2458_v7 }
  0x1b   :  { %v2523_v40 = vrot.slane %v2517_v36, %v2458_v7  ;;  %v2532_v46 = vrot.slane %v35_v43, %v2458_v7  ;;  %v2543_v49 = vrot.slane %v2537_v47, %v2458_v7  ;;  %v2558_v56 = vrot.slane %v2551_v52, %v2458_v7 }
  0x1c   :  { %v504_v14 = vrot.slane %v488_v11, %v2458_v7  ;;  %v496_v16 = vcombine.high %v488_v11, %v488_v11  ;;  %v191_v17 = vcombine.high %v2473_v13, %v2473_v13  ;;  %v497_v23 = vcombine.high %v2477_v15, %v2477_v15 }
  0x1d   :  { %v545_v32 = vcombine.high %v2503_v26, %v2503_v26  ;;  %v58_v42 = vrot.slane %v2523_v40, %v2458_v7  ;;  %v65_v51 = vrot.slane %v2532_v46, %v2458_v7  ;;  %v796_v53 = vcombine.high %v2543_v49, %v2543_v49 }
  0x1e   :  { %v2487_v19 = vrot.slane %v504_v14, %v2468_v10  ;;  %v526_v20 = vcombine.high %v504_v14, %v504_v14  ;;  %v2490_v21 = vrot.slane %v496_v16, %v2458_v7  ;;  %v212_v22 = vrot.slane %v191_v17, %v2458_v7 }
  0x1f   :  { %v525_v27 = vrot.slane %v497_v23, %v2458_v7  ;;  %v566_v34 = vrot.slane %v545_v32, %v2458_v7  ;;  %v350_v44 = vrot.slane %v58_v42, %v2468_v10  ;;  %v80_v45 = vcombine.high %v58_v42, %v58_v42 }
  0x20   :  { %625 = vperm.xlu0 %2346, %v2487_v19   ;;  %v2497_v24 = vrot.slane %v526_v20, %v2468_v10  ;;  %v528_v25 = vcombine.high %v2490_v21, %v2490_v21  ;;  %v256_v29 = vrot.slane %v212_v22, %v2468_v10  ;;  %v214_v35 = vcombine.high %v212_v22, %v212_v22 }
  0x21   :  { %v595_v30 = vrot.slane %v525_v27, %v2468_v10  ;;  %v529_v31 = vcombine.high %v525_v27, %v525_v27  ;;  %v611_v37 = vrot.slane %v566_v34, %v2468_v10  ;;  %v568_v38 = vcombine.high %v566_v34, %v566_v34 }
  0x22   :  { %278 = vperm.xlu1 %2345, %v2497_v24   ;;  %v587_v28 = vrot.slane %v528_v25, %v2468_v10  ;;  %v264_v39 = vrot.slane %v214_v35, %v2468_v10  ;;  %v358_v50 = vrot.slane %v80_v45, %v2468_v10  ;;  %v366_v54 = vrot.slane %v65_v51, %v2468_v10 }
  0x23   :  { %v603_v33 = vrot.slane %v529_v31, %v2468_v10  ;;  %v619_v41 = vrot.slane %v568_v38, %v2468_v10  ;;  %v81_v55 = vcombine.high %v65_v51, %v65_v51  ;;  %v817_v57 = vrot.slane %v796_v53, %v2458_v7 }
  0x24   :  { %637 = vperm.xlu0 %2346, %v587_v28   ;;  %v106_v59 = vrot.slane %v2558_v56, %v2458_v7  ;;  %v98_v2 = vrot.slane %v84_v60, %v2458_v7  ;;  %v224_v11 = vrot.slane %v2490_v21, %v2468_v10  ;;  %v157_v12 = vrot.slane %v2477_v15, %v2458_v7 }
  0x25   :  { %v374_v58 = vrot.slane %v81_v55, %v2468_v10  ;;  %v862_v61 = vrot.slane %v817_v57, %v2468_v10  ;;  %v819_v62 = vcombine.high %v817_v57, %v817_v57  ;;  %v176_v20 = vcombine.high %v2466_v9, %v2466_v9 }
  0x26   :  { %306 = vperm.xlu1 %2345, %v256_v29   ;;  %v382_v63 = vrot.slane %v106_v59, %v2468_v10  ;;  %v121_v0 = vcombine.high %v106_v59, %v106_v59  ;;  %v113_v6 = vrot.slane %v98_v2, %v2458_v7  ;;  %v236_v14 = vrot.slane %v157_v12, %v2468_v10 }
  0x27   :  { %v870_v3 = vrot.slane %v819_v62, %v2468_v10  ;;  %v173_v16 = vcombine.high %v157_v12, %v157_v12  ;;  %v190_v22 = vrot.slane %v176_v20, %v2458_v7  ;;  %v552_v23 = vrot.slane %v2503_v26, %v2458_v7 }
  0x28   :  { %645 = vperm.xlu0 %2346, %v595_v30   ;;  %v390_v5 = vrot.slane %v121_v0, %v2468_v10  ;;  %v398_v8 = vrot.slane %v113_v6, %v2468_v10  ;;  %v530_v25 = vcombine.high %v2484_v18, %v2484_v18  ;;  %v50_v27 = vcombine.high %v2523_v40, %v2523_v40 }
  0x29   :  { %v244_v17 = vrot.slane %v173_v16, %v2468_v10  ;;  %v205_v9 = vrot.slane %v190_v22, %v2458_v7  ;;  %v567_v29 = vcombine.high %v552_v23, %v552_v23  ;;  %v51_v35 = vcombine.high %v2532_v46, %v2532_v46 }
  0x2a   :  { %282 = vperm.xlu1 %2345, %v587_v28   ;;  %v72_v31 = vrot.slane %v50_v27, %v2458_v7  ;;  %v99_v42 = vcombine.high %v2558_v56, %v2558_v56  ;;  %v31_v43 = vmin.f32 %v2517_v36, 21.0  ;;  %v803_v36 = vrot.slane %v2543_v49, %v2458_v7 }
  0x2b   :  { %v268_v26 = vrot.slane %v205_v9, %v2468_v10  ;;  %v615_v18 = vrot.slane %v567_v29, %v2468_v10  ;;  %v781_v55 = vcombine.high %v2537_v47, %v2537_v47 }
  0x2c   :  { %653 = vperm.xlu0 %2346, %v603_v33   ;;  %v82_v34 = vcombine.high %v72_v31, %v72_v31  ;;  %v120_v45 = vrot.slane %v99_v42, %v2458_v7  ;;  %v1014_v46 = vrot.slane %v31_v43, %v2458_v7  ;;  %v858_v59 = vrot.slane %v803_v36, %v2468_v10 }
  0x2d   :  { %v818_v60 = vcombine.high %v803_v36, %v803_v36 }
  0x2e   :  { %290 = vperm.xlu1 %2345, %v595_v30   ;;  %v362_v38 = vrot.slane %v82_v34, %v2468_v10  ;;  %v122_v51 = vcombine.high %v120_v45, %v120_v45  ;;  %v1022_v53 = vcombine.high %v1014_v46, %v1014_v46  ;;  %v1030_v57 = vrot.slane %v1014_v46, %v2458_v7 }
  0x2f   :  { %v866_v0 = vrot.slane %v818_v60, %v2468_v10  ;;  %v2700_v60 = vld [vmem:[#allocation2 + $0x18] sm:$0xff] }
  0x30   :  { %661 = vperm.xlu0 %2346, %v611_v37   ;;  %v394_v56 = vrot.slane %v122_v51, %v2468_v10  ;;  %v1098_v49 = vrot.slane %v1030_v57, %v2468_v10  ;;  %v1052_v16 = vcombine.high %v1030_v57, %v1030_v57 }
  0x32   :  { %314 = vperm.xlu1 %2345, %v264_v39   ;;  %v79_v39 = vrot.slane %v51_v35, %v2458_v7  ;;  %v1106_v20 = vrot.slane %v1052_v16, %v2468_v10 }
  0x34   :  { %669 = vperm.xlu0 %2346, %v619_v41   ;;  %v370_v40 = vrot.slane %v79_v39, %v2468_v10  ;;  %v83_v41 = vcombine.high %v79_v39, %v79_v39 }
  0x36   :  { %298 = vperm.xlu1 %2345, %v603_v33  }
  0x38   :  { %2348 = vset.pattern.permute.xlu0 %v3389_v48 }
  0x39   :  { %876 = vperm.xlu0 %2348, %v2487_v19  }
  0x3a   :  { %400 = vperm.xlu1 %2345, %v350_v44   ;;  %v378_v44 = vrot.slane %v83_v41, %v2468_v10 }
  0x3d   :  { %888 = vperm.xlu0 %2348, %v587_v28   ;;  %v607_v28 = vrot.slane %v552_v23, %v2468_v10 }
  0x3e   :  { %408 = vperm.xlu1 %2345, %v358_v50   ;;  %v386_v50 = vrot.slane %v120_v45, %v2468_v10 }
  0x41   :  { %896 = vperm.xlu0 %2348, %v595_v30   ;;  %v544_v30 = vrot.slane %v530_v25, %v2458_v7 }
  0x42   :  { %416 = vperm.xlu1 %2345, %v366_v54   ;;  %v1007_v54 = vcombine.high %v31_v43, %v31_v43 }
  0x43   :  { %v559_v32 = vrot.slane %v544_v30, %v2458_v7 }
  0x45   :  { %904 = vperm.xlu0 %2348, %v603_v33   ;;  %v354_v33 = vrot.slane %v72_v31, %v2468_v10  ;;  %v623_v37 = vrot.slane %v559_v32, %v2468_v10 }
  0x46   :  { %424 = vperm.xlu1 %2345, %v374_v58   ;;  %v1021_v58 = vrot.slane %v1007_v54, %v2458_v7 }
  0x48   :  { %v1023_v47 = vcombine.high %v1021_v58, %v1021_v58 }
  0x49   :  { %912 = vperm.xlu0 %2348, %v862_v61   ;;  %v795_v61 = vrot.slane %v781_v55, %v2458_v7 }
  0x4a   :  { %432 = vperm.xlu1 %2345, %v382_v63   ;;  %v32_v63 = vmin.f32 %v2551_v52, 21.0 }
  0x4b   :  { %v810_v2 = vrot.slane %v795_v61, %v2458_v7  ;;  %v2702_v61 = vld [vmem:[#allocation2] sm:$0xff] }
  0x4c   :  { %v1063_v6 = vrot.slane %v32_v63, %v2458_v7  ;;  %v1056_v27 = vcombine.high %v32_v63, %v32_v63 }
  0x4d   :  { %920 = vperm.xlu0 %2348, %v870_v3  }
  0x4e   :  { %440 = vperm.xlu1 %2345, %v390_v5   ;;  %v1051_v5 = vrot.slane %v1023_v47, %v2458_v7  ;;  %v1071_v52 = vcombine.high %v1063_v6, %v1063_v6  ;;  %v1070_v30 = vrot.slane %v1056_v27, %v2458_v7 }
  0x50   :  { %v1055_v12 = vcombine.high %v1051_v5, %v1051_v5  ;;  %v1085_v32 = vrot.slane %v1070_v30, %v2458_v7 }
  0x51   :  { %2350 = vset.pattern.permute.xlu0 %v2417_v4 }
  0x52   :  { %270 = vperm.xlu0 %2350, %v2487_v19   ;;  %448 = vperm.xlu1 %2345, %v398_v8   ;;  %v198_v19 = vrot.slane %v2473_v13, %v2458_v7  ;;  %v874_v8 = vrot.slane %v810_v2, %v2468_v10  ;;  %v1146_v35 = vrot.slane %v1085_v32, %v2468_v10  ;;  %v2710_v2 = vld [vmem:[#allocation2 + $0x20] sm:$0xff] }
  0x54   :  { %v252_v15 = vrot.slane %v198_v19, %v2468_v10  ;;  %v213_v21 = vcombine.high %v198_v19, %v198_v19  ;;  %v1092_v19 = vrot.slane %v1071_v52, %v2458_v7 }
  0x56   :  { %274 = vperm.xlu0 %2350, %v224_v11   ;;  %2347 = vset.pattern.permute.xlu1 %v3391_v1  ;;  %v260_v13 = vrot.slane %v213_v21, %v2468_v10  ;;  %v1134_v21 = vrot.slane %v1092_v19, %v2468_v10  ;;  %v1094_v22 = vcombine.high %v1092_v19, %v1092_v19 }
  0x57   :  { %629 = vperm.xlu1 %2347, %v224_v11  }
  0x5a   :  { %286 = vperm.xlu0 %2350, %v236_v14  }
  0x5b   :  { %633 = vperm.xlu1 %2347, %v2497_v24  }
  0x5e   :  { %294 = vperm.xlu0 %2350, %v244_v17  }
  0x5f   :  { %641 = vperm.xlu1 %2347, %v236_v14  }
  0x62   :  { %302 = vperm.xlu0 %2350, %v252_v15   ;;  %v1037_v15 = vrot.slane %v1021_v58, %v2458_v7 }
  0x63   :  { %649 = vperm.xlu1 %2347, %v244_v17  }
  0x64   :  { %v1114_v23 = vrot.slane %v1037_v15, %v2468_v10  ;;  %v1053_v25 = vcombine.high %v1037_v15, %v1037_v15 }
  0x66   :  { %310 = vperm.xlu0 %2350, %v260_v13   ;;  %v1142_v13 = vrot.slane %v1094_v22, %v2468_v10  ;;  %v1122_v9 = vrot.slane %v1053_v25, %v2468_v10 }
  0x67   :  { %657 = vperm.xlu1 %2347, %v607_v28  }
  0x6a   :  { %318 = vperm.xlu0 %2350, %v268_v26  }
  0x6b   :  { %665 = vperm.xlu1 %2347, %v615_v18  }
  0x6e   :  { %404 = vperm.xlu0 %2350, %v354_v33  }
  0x6f   :  { %673 = vperm.xlu1 %2347, %v623_v37  }
  0x72   :  { %412 = vperm.xlu0 %2350, %v362_v38  }
  0x73   :  { %2349 = vset.pattern.permute.xlu1 %v3389_v48 }
  0x74   :  { %880 = vperm.xlu1 %2349, %v224_v11   ;;  %v1118_v11 = vrot.slane %v1051_v5, %v2468_v10 }
  0x76   :  { %420 = vperm.xlu0 %2350, %v370_v40  }
  0x78   :  { %884 = vperm.xlu1 %2349, %v2497_v24   ;;  %v1044_v24 = vrot.slane %v1022_v53, %v2458_v7 }
  0x7a   :  { %428 = vperm.xlu0 %2350, %v378_v44   ;;  %v1054_v62 = vcombine.high %v1044_v24, %v1044_v24 }
  0x7c   :  { %892 = vperm.xlu1 %2349, %v236_v14   ;;  %v1110_v3 = vrot.slane %v1054_v62, %v2468_v10  ;;  %v1102_v14 = vrot.slane %v1044_v24, %v2468_v10 }
  0x7e   :  { %436 = vperm.xlu0 %2350, %v386_v50  }
  0x80   :  { %900 = vperm.xlu1 %2349, %v244_v17   ;;  %v1126_v17 = vrot.slane %v1055_v12, %v2468_v10 }
  0x82   :  { %444 = vperm.xlu0 %2350, %v394_v56  }
  0x84   :  { %908 = vperm.xlu1 %2349, %v858_v59   ;;  %v2698_v59 = vld [vmem:[#allocation2 + $0x10] sm:$0xff] }
  0x86   :  { %1148 = vperm.xlu0 %2350, %v1098_v49   ;;  %v2704_v49 = vld [vmem:[#allocation2 + $0x8] sm:$0xff] }
  0x88   :  { %916 = vperm.xlu1 %2349, %v866_v0  }
  0x8a   :  { %1160 = vperm.xlu0 %2350, %v1110_v3   ;;  %v2712_v3 = vld [vmem:[#allocation2 + $0x28] sm:$0xff] }
  0x8c   :  { %924 = vperm.xlu1 %2349, %v874_v8  }
  0x8e   :  { %1168 = vperm.xlu0 %2350, %v1118_v11  }
  0x90   :  { %2351 = vset.pattern.permute.xlu1 %v2417_v4  ;;  %v1078_v4 = vrot.slane %v1063_v6, %v2458_v7 }
  0x91   :  { %1152 = vperm.xlu1 %2351, %v1102_v14  }
  0x92   :  { %1176 = vperm.xlu0 %2350, %v1126_v17   ;;  %v1130_v28 = vrot.slane %v1078_v4, %v2468_v10  ;;  %v1093_v29 = vcombine.high %v1078_v4, %v1078_v4 }
  0x94   :  { %v1138_v18 = vrot.slane %v1093_v29, %v2468_v10 }
  0x95   :  { %1156 = vperm.xlu1 %2351, %v1106_v20  }
  0x96   :  { %1184 = vperm.xlu0 %2350, %v1134_v21  }
  0x99   :  { %1164 = vperm.xlu1 %2351, %v1114_v23  }
  0x9a   :  { %1192 = vperm.xlu0 %2350, %v1142_v13  }
  0x9d   :  { %1172 = vperm.xlu1 %2351, %v1122_v9  }
  0x9f   :  { %v626_v26 = vpop.permute.xlu0 %625 }
  0xa0   :  { %v676_v5 = vmul.f32 %v626_v26, %v2698_v59  ;;  %v677_v6 = vmul.f32 %v626_v26, %v2700_v60 }
  0xa1   :  { %v2651_v31 = vpop.permute.xlu1 %278  ;;  %1180 = vperm.xlu1 %2351, %v1130_v28  }
  0xa3   :  { %v2655_v33 = vpop.permute.xlu0 %637 }
  0xa5   :  { %v2657_v34 = vpop.permute.xlu1 %306  ;;  %1188 = vperm.xlu1 %2351, %v1138_v18  }
  0xa7   :  { %v2660_v37 = vpop.permute.xlu0 %645 }
  0xa9   :  { %v2662_v38 = vpop.permute.xlu1 %282  ;;  %1196 = vperm.xlu1 %2351, %v1146_v35  }
  0xab   :  { %v2664_v39 = vpop.permute.xlu0 %653 }
  0xad   :  { %v2666_v40 = vpop.permute.xlu1 %290 }
  0xaf   :  { %v2668_v41 = vpop.permute.xlu0 %661 }
  0xb1   :  { %v2670_v42 = vpop.permute.xlu1 %314 }
  0xb3   :  { %v2672_v43 = vpop.permute.xlu0 %669 }
  0xb5   :  { %v2674_v44 = vpop.permute.xlu1 %298 }
  0xb8   :  { %v877_v45 = vpop.permute.xlu0 %876 }
  0xb9   :  { %v2676_v46 = vpop.permute.xlu1 %400  ;;  %v927_v52 = vmul.f32 %v877_v45, %v2710_v2  ;;  %v928_v14 = vmul.f32 %v877_v45, %v2712_v3 }
  0xba   :  { %3402 = vst [vmem:[#allocation9_spill] sm:$0xff] %v2676_v46 }
  0xbc   :  { %v2678_v50 = vpop.permute.xlu0 %888 }
  0xbd   :  { %v2680_v51 = vpop.permute.xlu1 %408 }
  0xc0   :  { %v2682_v53 = vpop.permute.xlu0 %896 }
  0xc1   :  { %v2684_v54 = vpop.permute.xlu1 %416 }
  0xc4   :  { %v2686_v36 = vpop.permute.xlu0 %904 }
  0xc5   :  { %v2688_v55 = vpop.permute.xlu1 %424 }
  0xc8   :  { %v2690_v56 = vpop.permute.xlu0 %912 }
  0xc9   :  { %v2692_v57 = vpop.permute.xlu1 %432 }
  0xcc   :  { %v2694_v24 = vpop.permute.xlu0 %920 }
  0xcd   :  { %v2696_v58 = vpop.permute.xlu1 %440 }
  0xd1   :  { %v271_v62 = vpop.permute.xlu0 %270  ;;  %v2706_v47 = vpop.permute.xlu1 %448 }
  0xd2   :  { %3403 = vst [vmem:[#allocation10_spill] sm:$0xff] %v2706_v47  ;;  %v321_v63 = vmul.f32 %v271_v62, %v2702_v61  ;;  %v322_v0 = vmul.f32 %v271_v62, %v2704_v49 }
  0xd4   :  { %v451_v8 = vadd.f32 %v2676_v46, %v321_v63  ;;  %v452_v11 = vadd.f32 %v2676_v46, %v322_v0  ;;  %v325_v0 = vmul.f32 %v2651_v31, %v2702_v61 }
  0xd5   :  { %v275_v12 = vpop.permute.xlu0 %274 }
  0xd6   :  { %v630_v16 = vpop.permute.xlu1 %629  ;;  %v703_v17 = vadd.f32 %v677_v6, %v452_v11  ;;  %v702_v19 = vadd.f32 %v676_v5, %v451_v8  ;;  %v323_v32 = vmul.f32 %v275_v12, %v2702_v61  ;;  %v324_v35 = vmul.f32 %v275_v12, %v2704_v49 }
  0xd7   :  { %v326_v5 = vmul.f32 %v2651_v31, %v2704_v49  ;;  %v682_v6 = vmul.f32 %v2655_v33, %v2698_v59  ;;  %v683_v12 = vmul.f32 %v2655_v33, %v2700_v60  ;;  %v328_v31 = vmul.f32 %v2662_v38, %v2704_v49 }
  0xd8   :  { %v954_v20 = vadd.f32 %v928_v14, %v703_v17  ;;  %v953_v15 = vadd.f32 %v927_v52, %v702_v19  ;;  %v678_v52 = vmul.f32 %v630_v16, %v2698_v59  ;;  %v679_v14 = vmul.f32 %v630_v16, %v2700_v60 }
  0xd9   :  { %v287_v21 = vpop.permute.xlu0 %286  ;;  %v327_v19 = vmul.f32 %v2662_v38, %v2702_v61  ;;  %v456_v48 = vadd.f32 %v2680_v51, %v326_v5 }
  0xda   :  { %v634_v22 = vpop.permute.xlu1 %633  ;;  %v980_v23 = vmin.f32 %v954_v20, 21.0  ;;  %v979_v25 = vmin.f32 %v953_v15, 21.0  ;;  %v329_v8 = vmul.f32 %v287_v21, %v2702_v61  ;;  %v330_v17 = vmul.f32 %v287_v21, %v2704_v49 }
  0xdb   :  { %v680_v20 = vmul.f32 %v634_v22, %v2698_v59  ;;  %v681_v15 = vmul.f32 %v634_v22, %v2700_v60  ;;  %v455_v21 = vadd.f32 %v2680_v51, %v325_v0 }
  0xdc   :  { %1267 = vrot.lane.b32.xlu1 %v980_v23, %s2419_s2  ;;  %1265 = vrot.lane.b32.xlu0 %v979_v25, %s2419_s2  ;;  %v459_v16 = vadd.f32 %v2684_v54, %v329_v8 }
  0xdd   :  { %v2722_v13 = vpop.permute.xlu0 %294  ;;  %v706_v47 = vadd.f32 %v680_v20, %v455_v21 }
  0xde   :  { %v642_v9 = vpop.permute.xlu1 %641 }
  0xdf   :  { %v684_v1 = vmul.f32 %v642_v9, %v2698_v59  ;;  %v685_v22 = vmul.f32 %v642_v9, %v2700_v60  ;;  %v331_v9 = vmul.f32 %v2666_v40, %v2702_v61 }
  0xe1   :  { %v2724_v4 = vpop.permute.xlu0 %302  ;;  %v710_v20 = vadd.f32 %v684_v1, %v459_v16 }
  0xe2   :  { %v2726_v27 = vpop.permute.xlu1 %649 }
  0xe5   :  { %v2728_v28 = vpop.permute.xlu0 %310 }
  0xe6   :  { %v2730_v29 = vpop.permute.xlu1 %657 }
  0xe9   :  { %v2732_v30 = vpop.permute.xlu0 %318 }
  0xea   :  { %v2734_v26 = vpop.permute.xlu1 %665 }
  0xed   :  { %v2736_v18 = vpop.permute.xlu0 %404 }
  0xee   :  { %3404 = vst [vmem:[#allocation11_spill] sm:$0xff] %v2736_v18  ;;  %v2740_v45 = vpop.permute.xlu1 %673  ;;  %v454_v62 = vadd.f32 %v2736_v18, %v324_v35  ;;  %v453_v63 = vadd.f32 %v2736_v18, %v323_v32  ;;  %v460_v18 = vadd.f32 %v2684_v54, %v330_v17  ;;  %v686_v17 = vmul.f32 %v2660_v37, %v2698_v59 }
  0xf0   :  { %v705_v32 = vadd.f32 %v679_v14, %v454_v62  ;;  %v704_v35 = vadd.f32 %v678_v52, %v453_v63 }
  0xf1   :  { %v2751_v11 = vpop.permute.xlu0 %412 }
  0xf2   :  { %v458_v63 = vadd.f32 %v2751_v11, %v328_v31  ;;  %v457_v8 = vadd.f32 %v2751_v11, %v327_v19  ;;  %v711_v31 = vadd.f32 %v685_v22, %v460_v18  ;;  %v687_v18 = vmul.f32 %v2660_v37, %v2700_v60 }
  0xf3   :  { %v881_v23 = vpop.permute.xlu1 %880  ;;  %v933_v22 = vmul.f32 %v2678_v50, %v2710_v2 }
  0xf4   :  { %v929_v25 = vmul.f32 %v881_v23, %v2710_v2  ;;  %v930_v33 = vmul.f32 %v881_v23, %v2712_v3  ;;  %v707_v23 = vadd.f32 %v681_v15, %v456_v48  ;;  %v332_v48 = vmul.f32 %v2666_v40, %v2704_v49 }
  0xf5   :  { %v2770_v38 = vpop.permute.xlu0 %420 }
  0xf6   :  { %v956_v46 = vadd.f32 %v930_v33, %v705_v32  ;;  %v955_v10 = vadd.f32 %v929_v25, %v704_v35  ;;  %v709_v25 = vadd.f32 %v683_v12, %v458_v63  ;;  %v708_v33 = vadd.f32 %v682_v6, %v457_v8 }
  0xf7   :  { %v885_v62 = vpop.permute.xlu1 %884  ;;  %v462_v32 = vadd.f32 %v2770_v38, %v332_v48  ;;  %v461_v35 = vadd.f32 %v2770_v38, %v331_v9  ;;  %v333_v6 = vmul.f32 %v2722_v13, %v2702_v61  ;;  %v335_v63 = vmul.f32 %v2674_v44, %v2702_v61 }
  0xf8   :  { %v931_v0 = vmul.f32 %v885_v62, %v2710_v2  ;;  %v932_v5 = vmul.f32 %v885_v62, %v2712_v3  ;;  %v982_v52 = vmin.f32 %v956_v46, 21.0  ;;  %v981_v14 = vmin.f32 %v955_v10, 21.0 }
  0xf9   :  { %v2784_v15 = vpop.permute.xlu0 %428  ;;  %v712_v9 = vadd.f32 %v686_v17, %v461_v35  ;;  %v336_v48 = vmul.f32 %v2674_v44, %v2704_v49  ;;  %v689_v17 = vmul.f32 %v2726_v27, %v2700_v60 }
  0xfa   :  { %1271 = vrot.lane.b32.xlu1 %v982_v52, %s2419_s2  ;;  %1269 = vrot.lane.b32.xlu0 %v981_v14, %s2419_s2  ;;  %v958_v19 = vadd.f32 %v932_v5, %v707_v23  ;;  %v957_v46 = vadd.f32 %v931_v0, %v706_v47  ;;  %v934_v47 = vmul.f32 %v2678_v50, %v2712_v3 }
  0xfb   :  { %v893_v10 = vpop.permute.xlu1 %892  ;;  %v334_v23 = vmul.f32 %v2722_v13, %v2704_v49  ;;  %v959_v50 = vadd.f32 %v933_v22, %v708_v33  ;;  %v713_v14 = vadd.f32 %v687_v18, %v462_v32  ;;  %v937_v13 = vmul.f32 %v2682_v53, %v2710_v2 }
  0xfc   :  { %v935_v21 = vmul.f32 %v893_v10, %v2710_v2  ;;  %v936_v1 = vmul.f32 %v893_v10, %v2712_v3  ;;  %v984_v40 = vmin.f32 %v958_v19, 21.0  ;;  %v983_v16 = vmin.f32 %v957_v46, 21.0 }
  0xfd   :  { %v2800_v12 = vpop.permute.xlu0 %436  ;;  %v960_v0 = vadd.f32 %v934_v47, %v709_v25  ;;  %v464_v46 = vadd.f32 %v2688_v55, %v334_v23  ;;  %v688_v10 = vmul.f32 %v2726_v27, %v2698_v59  ;;  %v466_v33 = vadd.f32 %v2784_v15, %v336_v48 }
  0xfe   :  { %1275 = vrot.lane.b32.xlu1 %v984_v40, %s2419_s2  ;;  %1273 = vrot.lane.b32.xlu0 %v983_v16, %s2419_s2  ;;  %v962_v62 = vadd.f32 %v936_v1, %v711_v31  ;;  %v961_v37 = vadd.f32 %v935_v21, %v710_v20  ;;  %v938_v31 = vmul.f32 %v2682_v53, %v2712_v3  ;;  %v985_v53 = vmin.f32 %v959_v50, 21.0 }
  0xff   :  { %v901_v8 = vpop.permute.xlu1 %900  ;;  %v463_v20 = vadd.f32 %v2688_v55, %v333_v6  ;;  %v986_v25 = vmin.f32 %v960_v0, 21.0  ;;  %v465_v32 = vadd.f32 %v2784_v15, %v335_v63  ;;  %v963_v40 = vadd.f32 %v937_v13, %v712_v9 }
 0x100   :  { %v988_v5 = vmin.f32 %v962_v62, 21.0  ;;  %v987_v52 = vmin.f32 %v961_v37, 21.0  ;;  %v939_v35 = vmul.f32 %v901_v8, %v2710_v2  ;;  %v940_v21 = vmul.f32 %v901_v8, %v2712_v3 }
 0x101   :  { %v2815_v19 = vpop.permute.xlu0 %444  ;;  %v964_v1 = vadd.f32 %v938_v31, %v713_v14  ;;  %v690_v27 = vmul.f32 %v2664_v39, %v2698_v59  ;;  %v691_v16 = vmul.f32 %v2664_v39, %v2700_v60  ;;  %v337_v18 = vmul.f32 %v2724_v4, %v2702_v61 }
 0x102   :  { %1283 = vrot.lane.b32.xlu1 %v988_v5, %s2419_s2  ;;  %1281 = vrot.lane.b32.xlu0 %v987_v52, %s2419_s2  ;;  %v338_v47 = vmul.f32 %v2724_v4, %v2704_v49  ;;  %v714_v6 = vadd.f32 %v688_v10, %v463_v20  ;;  %v715_v23 = vadd.f32 %v689_v17, %v464_v46  ;;  %v989_v8 = vmin.f32 %v963_v40, 21.0 }
 0x103   :  { %v909_v44 = vpop.permute.xlu1 %908  ;;  %v339_v39 = vmul.f32 %v2657_v34, %v2702_v61  ;;  %v717_v62 = vadd.f32 %v691_v16, %v466_v33  ;;  %v716_v37 = vadd.f32 %v690_v27, %v465_v32  ;;  %v990_v63 = vmin.f32 %v964_v1, 21.0 }
 0x104   :  { %v966_v0 = vadd.f32 %v940_v21, %v715_v23  ;;  %v965_v50 = vadd.f32 %v939_v35, %v714_v6  ;;  %v340_v5 = vmul.f32 %v2657_v34, %v2704_v49  ;;  %v941_v52 = vmul.f32 %v2686_v36, %v2710_v2 }
 0x105   :  { %v1149_v22 = vpop.permute.xlu0 %1148  ;;  %v942_v14 = vmul.f32 %v2686_v36, %v2712_v3  ;;  %v467_v9 = vadd.f32 %v2692_v57, %v337_v18  ;;  %v468_v13 = vadd.f32 %v2692_v57, %v338_v47  ;;  %v692_v31 = vmul.f32 %v2730_v29, %v2698_v59 }
 0x106   :  { %1279 = vrot.lane.b32.xlu1 %v986_v25, %s2419_s2  ;;  %1277 = vrot.lane.b32.xlu0 %v985_v53, %s2419_s2  ;;  %1200 = vst.msk [vmem:[#allocation5] sm:$0xff] %vm1199_vm0, %v1149_v22  ;;  %1201 = vst.msk [vmem:[#allocation5 + $0x8] sm:$0xff] %vm1199_vm0, %v1149_v22  ;;  %v693_v20 = vmul.f32 %v2730_v29, %v2700_v60  ;;  %v967_v36 = vadd.f32 %v941_v52, %v716_v37  ;;  %v992_v53 = vmin.f32 %v966_v0, 21.0 }
 0x107   :  { %1202 = vst.msk [vmem:[#allocation5 + $0x10] sm:$0xff] %vm1199_vm0, %v1149_v22  ;;  %2150 = vst.msk [vmem:[#allocation5 + $0x138] sm:$0xff] %vm1199_vm0, %v1149_v22  ;;  %v2846_v4 = vpop.permute.xlu1 %916  ;;  %v968_v34 = vadd.f32 %v942_v14, %v717_v62  ;;  %v470_v29 = vadd.f32 %v2800_v12, %v340_v5  ;;  %v469_v46 = vadd.f32 %v2800_v12, %v339_v39  ;;  %v991_v33 = vmin.f32 %v965_v50, 21.0 }
 0x108   :  { %2151 = vst.msk [vmem:[#allocation5 + $0x140] sm:$0xff] %vm1199_vm0, %v1149_v22  ;;  %2152 = vst.msk [vmem:[#allocation5 + $0x148] sm:$0xff] %vm1199_vm0, %v1149_v22  ;;  %v943_v10 = vmul.f32 %v909_v44, %v2710_v2  ;;  %v944_v17 = vmul.f32 %v909_v44, %v2712_v3  ;;  %v694_v32 = vmul.f32 %v2668_v41, %v2698_v59  ;;  %v993_v22 = vmin.f32 %v967_v36, 21.0 }
 0x109   :  { %v1161_v48 = vpop.permute.xlu0 %1160  ;;  %v695_v35 = vmul.f32 %v2668_v41, %v2700_v60  ;;  %v341_v21 = vmul.f32 %v2728_v28, %v2702_v61  ;;  %v342_v40 = vmul.f32 %v2728_v28, %v2704_v49  ;;  %v718_v27 = vadd.f32 %v692_v31, %v467_v9 }
 0x10a   :  { %1287 = vrot.lane.b32.xlu1 %v990_v63, %s2419_s2  ;;  %1285 = vrot.lane.b32.xlu0 %v989_v8, %s2419_s2  ;;  %1209 = vst.msk [vmem:[#allocation5 + $0x48] sm:$0xff] %vm1199_vm0, %v1161_v48  ;;  %1210 = vst.msk [vmem:[#allocation5 + $0x50] sm:$0xff] %vm1199_vm0, %v1161_v48  ;;  %v719_v16 = vadd.f32 %v693_v20, %v468_v13  ;;  %v343_v41 = vmul.f32 %v2670_v42, %v2702_v61  ;;  %v994_v18 = vmin.f32 %v968_v34, 21.0 }
 0x10b   :  { %1211 = vst.msk [vmem:[#allocation5 + $0x58] sm:$0xff] %vm1199_vm0, %v1161_v48  ;;  %2159 = vst.msk [vmem:[#allocation5 + $0x180] sm:$0xff] %vm1199_vm0, %v1161_v48  ;;  %v2872_v25 = vpop.permute.xlu1 %924  ;;  %v721_v28 = vadd.f32 %v695_v35, %v470_v29  ;;  %v720_v44 = vadd.f32 %v694_v32, %v469_v46  ;;  %v969_v6 = vadd.f32 %v943_v10, %v718_v27 }
 0x10c   :  { %2160 = vst.msk [vmem:[#allocation5 + $0x188] sm:$0xff] %vm1199_vm0, %v1161_v48  ;;  %2161 = vst.msk [vmem:[#allocation5 + $0x190] sm:$0xff] %vm1199_vm0, %v1161_v48  ;;  %v970_v47 = vadd.f32 %v944_v17, %v719_v16  ;;  %v344_v39 = vmul.f32 %v2670_v42, %v2704_v49  ;;  %v945_v62 = vmul.f32 %v2690_v56, %v2710_v2 }
 0x10d   :  { %v1169_v1 = vpop.permute.xlu0 %1168  ;;  %v946_v37 = vmul.f32 %v2690_v56, %v2712_v3  ;;  %v471_v63 = vadd.f32 %v2696_v58, %v341_v21  ;;  %v472_v42 = vadd.f32 %v2696_v58, %v342_v40  ;;  %v696_v56 = vmul.f32 %v2734_v26, %v2698_v59 }
 0x10e   :  { %1215 = vst.msk [vmem:[#allocation5 + $0x78] sm:$0xff] %vm1199_vm0, %v1169_v1  ;;  %1216 = vst.msk [vmem:[#allocation5 + $0x80] sm:$0xff] %vm1199_vm0, %v1169_v1  ;;  %1291 = vrot.lane.b32.xlu1 %v992_v53, %s2419_s2  ;;  %1289 = vrot.lane.b32.xlu0 %v991_v33, %s2419_s2  ;;  %v697_v0 = vmul.f32 %v2734_v26, %v2700_v60  ;;  %v971_v5 = vadd.f32 %v945_v62, %v720_v44  ;;  %v996_v48 = vmin.f32 %v970_v47, 21.0 }
 0x10f   :  { %1217 = vst.msk [vmem:[#allocation5 + $0x88] sm:$0xff] %vm1199_vm0, %v1169_v1  ;;  %2165 = vst.msk [vmem:[#allocation5 + $0x1b0] sm:$0xff] %vm1199_vm0, %v1169_v1  ;;  %v972_v50 = vadd.f32 %v946_v37, %v721_v28  ;;  %v474_v26 = vadd.f32 %v2815_v19, %v344_v39  ;;  %v473_v52 = vadd.f32 %v2815_v19, %v343_v41  ;;  %v995_v13 = vmin.f32 %v969_v6, 21.0 }
 0x110   :  { %2166 = vst.msk [vmem:[#allocation5 + $0x1b8] sm:$0xff] %vm1199_vm0, %v1169_v1  ;;  %2167 = vst.msk [vmem:[#allocation5 + $0x1c0] sm:$0xff] %vm1199_vm0, %v1169_v1  ;;  %v1153_v23 = vpop.permute.xlu1 %1152  ;;  %v947_v14 = vmul.f32 %v2846_v4, %v2710_v2  ;;  %v948_v9 = vmul.f32 %v2846_v4, %v2712_v3  ;;  %v698_v20 = vmul.f32 %v2672_v43, %v2698_v59  ;;  %v997_v32 = vmin.f32 %v971_v5, 21.0 }
 0x111   :  { %v1177_v8 = vpop.permute.xlu0 %1176  ;;  %1203 = vst.msk [vmem:[#allocation5 + $0x18] sm:$0xff] %vm1199_vm0, %v1153_v23  ;;  %1204 = vst.msk [vmem:[#allocation5 + $0x20] sm:$0xff] %vm1199_vm0, %v1153_v23  ;;  %v699_v34 = vmul.f32 %v2672_v43, %v2700_v60  ;;  %v722_v4 = vadd.f32 %v696_v56, %v471_v63  ;;  %v723_v29 = vadd.f32 %v697_v0, %v472_v42  ;;  %v1370_v43 = vld [vmem:[%s3386_s1] sm:$0xff]  ;;  %v998_v33 = vmin.f32 %v972_v50, 21.0 }
 0x112   :  { %1205 = vst.msk [vmem:[#allocation5 + $0x28] sm:$0xff] %vm1199_vm0, %v1153_v23  ;;  %2153 = vst.msk [vmem:[#allocation5 + $0x150] sm:$0xff] %vm1199_vm0, %v1153_v23  ;;  %1295 = vrot.lane.b32.xlu1 %v994_v18, %s2419_s2  ;;  %1293 = vrot.lane.b32.xlu0 %v993_v22, %s2419_s2  ;;  %v345_v46 = vmul.f32 %v2732_v30, %v2702_v61  ;;  %v346_v10 = vmul.f32 %v2732_v30, %v2704_v49 }
 0x113   :  { %2154 = vst.msk [vmem:[#allocation5 + $0x158] sm:$0xff] %vm1199_vm0, %v1153_v23  ;;  %2155 = vst.msk [vmem:[#allocation5 + $0x160] sm:$0xff] %vm1199_vm0, %v1153_v23  ;;  %v725_v17 = vadd.f32 %v699_v34, %v474_v26  ;;  %v724_v53 = vadd.f32 %v698_v20, %v473_v52  ;;  %v974_v35 = vadd.f32 %v948_v9, %v723_v29  ;;  %v3406_v26 = vld [vmem:[#allocation8_spill] sm:$0xff] }
 0x114   :  { %1221 = vst.msk [vmem:[#allocation5 + $0xa8] sm:$0xff] %vm1199_vm0, %v1177_v8  ;;  %1222 = vst.msk [vmem:[#allocation5 + $0xb0] sm:$0xff] %vm1199_vm0, %v1177_v8  ;;  %v1157_v31 = vpop.permute.xlu1 %1156  ;;  %v973_v21 = vadd.f32 %v947_v14, %v722_v4  ;;  %v949_v40 = vmul.f32 %v2694_v24, %v2710_v2  ;;  %v950_v27 = vmul.f32 %v2694_v24, %v2712_v3 }
 0x115   :  { %1223 = vst.msk [vmem:[#allocation5 + $0xb8] sm:$0xff] %vm1199_vm0, %v1177_v8  ;;  %2171 = vst.msk [vmem:[#allocation5 + $0x1e0] sm:$0xff] %vm1199_vm0, %v1177_v8  ;;  %v1185_v36 = vpop.permute.xlu0 %1184  ;;  %v1381_v41 = vrot.slane %v1370_v43, %v2458_v7  ;;  %v700_v61 = vmul.f32 %v2740_v45, %v2698_v59  ;;  %v701_v24 = vmul.f32 %v2740_v45, %v2700_v60  ;;  %v3405_v59 = vld [vmem:[#allocation10_spill] sm:$0xff]  ;;  %v1000_v18 = vmin.f32 %v974_v35, 21.0 }
 0x116   :  { %2172 = vst.msk [vmem:[#allocation5 + $0x1e8] sm:$0xff] %vm1199_vm0, %v1177_v8  ;;  %2173 = vst.msk [vmem:[#allocation5 + $0x1f0] sm:$0xff] %vm1199_vm0, %v1177_v8  ;;  %1299 = vrot.lane.b32.xlu1 %v996_v48, %s2419_s2  ;;  %1297 = vrot.lane.b32.xlu0 %v995_v13, %s2419_s2  ;;  %v475_v49 = vadd.f32 %v3405_v59, %v345_v46  ;;  %v476_v60 = vadd.f32 %v3405_v59, %v346_v10  ;;  %v999_v22 = vmin.f32 %v973_v21, 21.0 }
 0x117   :  { %1206 = vst.msk [vmem:[#allocation5 + $0x30] sm:$0xff] %vm1199_vm0, %v1157_v31  ;;  %1207 = vst.msk [vmem:[#allocation5 + $0x38] sm:$0xff] %vm1199_vm0, %v1157_v31  ;;  %v976_v30 = vadd.f32 %v950_v27, %v725_v17  ;;  %v975_v45 = vadd.f32 %v949_v40, %v724_v53  ;;  %v951_v28 = vmul.f32 %v2872_v25, %v2710_v2 }
 0x118   :  { %1208 = vst.msk [vmem:[#allocation5 + $0x40] sm:$0xff] %vm1199_vm0, %v1157_v31  ;;  %2156 = vst.msk [vmem:[#allocation5 + $0x168] sm:$0xff] %vm1199_vm0, %v1157_v31  ;;  %v1165_v1 = vpop.permute.xlu1 %1164  ;;  %v952_v44 = vmul.f32 %v2872_v25, %v2712_v3  ;;  %v1374_v6 = vcombine.high %v1370_v43, %v1370_v43  ;;  %v1389_v23 = vcombine.high %v1381_v41, %v1381_v41 }
 0x119   :  { %2157 = vst.msk [vmem:[#allocation5 + $0x170] sm:$0xff] %vm1199_vm0, %v1157_v31  ;;  %2158 = vst.msk [vmem:[#allocation5 + $0x178] sm:$0xff] %vm1199_vm0, %v1157_v31  ;;  %v1193_v16 = vpop.permute.xlu0 %1192  ;;  %v726_v2 = vadd.f32 %v700_v61, %v475_v49  ;;  %v727_v39 = vadd.f32 %v701_v24, %v476_v60  ;;  %v1002_v3 = vmin.f32 %v976_v30, 21.0  ;;  %v1001_v25 = vmin.f32 %v975_v45, 21.0  ;;  %v1371_v31 = vld [vmem:[%s3386_s1 + $0x8] sm:$0x1f] }
 0x11a   :  { %1227 = vst.msk [vmem:[#allocation5 + $0xd8] sm:$0xff] %vm1199_vm0, %v1185_v36  ;;  %1228 = vst.msk [vmem:[#allocation5 + $0xe0] sm:$0xff] %vm1199_vm0, %v1185_v36  ;;  %1303 = vrot.lane.b32.xlu1 %v998_v33, %s2419_s2  ;;  %1301 = vrot.lane.b32.xlu0 %v997_v32, %s2419_s2  ;;  %v1411_v8 = vrot.slane %v1389_v23, %v2458_v7  ;;  %v1388_v42 = vrot.slane %v1374_v6, %v2458_v7 }
 0x11b   :  { %1229 = vst.msk [vmem:[#allocation5 + $0xe8] sm:$0xff] %vm1199_vm0, %v1185_v36  ;;  %2177 = vst.msk [vmem:[#allocation5 + $0x210] sm:$0xff] %vm1199_vm0, %v1185_v36  ;;  %v978_v62 = vadd.f32 %v952_v44, %v727_v39  ;;  %v977_v37 = vadd.f32 %v951_v28, %v726_v2  ;;  %v1397_v56 = vrot.slane %v1381_v41, %v2458_v7  ;;  %v3407_v28 = vmov 1   ;;  %v1622_v44 = vld [vmem:[%s3386_s1 + $0x8] sm:$0x1f] }
 0x11c   :  { %2178 = vst.msk [vmem:[#allocation5 + $0x218] sm:$0xff] %vm1199_vm0, %v1185_v36  ;;  %2179 = vst.msk [vmem:[#allocation5 + $0x220] sm:$0xff] %vm1199_vm0, %v1185_v36  ;;  %v1173_v47 = vpop.permute.xlu1 %1172  ;;  %v2998_v52 = vrot.slane %v1411_v8, %v3406_v26  ;;  %v1390_v14 = vcombine.high %v1388_v42, %v1388_v42  ;;  %v1421_v48 = vcombine.high %v1411_v8, %v1411_v8 }
 0x11d   :  { %1212 = vst.msk [vmem:[#allocation5 + $0x60] sm:$0xff] %vm1199_vm0, %v1165_v1  ;;  %1213 = vst.msk [vmem:[#allocation5 + $0x68] sm:$0xff] %vm1199_vm0, %v1165_v1  ;;  %v1004_v0 = vmin.f32 %v978_v62, 21.0  ;;  %v1003_v50 = vmin.f32 %v977_v37, 21.0  ;;  %v3009_v9 = vrot.slane %v1397_v56, %v3406_v26  ;;  %v1419_v13 = vcombine.high %v1397_v56, %v1397_v56 }
 0x11e   :  { %1214 = vst.msk [vmem:[#allocation5 + $0x70] sm:$0xff] %vm1199_vm0, %v1165_v1  ;;  %2162 = vst.msk [vmem:[#allocation5 + $0x198] sm:$0xff] %vm1199_vm0, %v1165_v1  ;;  %1307 = vrot.lane.b32.xlu1 %v1000_v18, %s2419_s2  ;;  %1305 = vrot.lane.b32.xlu0 %v999_v22, %s2419_s2  ;;  %v1418_v34 = vrot.slane %v1390_v14, %v2458_v7  ;;  %v1430_v36 = vrot.slane %v1371_v31, %v2458_v7 }
 0x11f   :  { %2163 = vst.msk [vmem:[#allocation5 + $0x1a0] sm:$0xff] %vm1199_vm0, %v1165_v1  ;;  %2164 = vst.msk [vmem:[#allocation5 + $0x1a8] sm:$0xff] %vm1199_vm0, %v1165_v1  ;;  %v3025_v4 = vrot.slane %v1421_v48, %v3406_v26  ;;  %v3028_v29 = vrot.slane %v1419_v13, %v3406_v26  ;;  %v1404_v43 = vrot.slane %v1388_v42, %v2458_v7 }
 0x120   :  { %1233 = vst.msk [vmem:[#allocation5 + $0x108] sm:$0xff] %vm1199_vm0, %v1193_v16  ;;  %1234 = vst.msk [vmem:[#allocation5 + $0x110] sm:$0xff] %vm1199_vm0, %v1193_v16  ;;  %v1181_v63 = vpop.permute.xlu1 %1180  ;;  %v3032_v46 = vrot.slane %v1418_v34, %v3406_v26  ;;  %v1438_v10 = vcombine.high %v1430_v36, %v1430_v36  ;;  %v1422_v53 = vcombine.high %v1418_v34, %v1418_v34 }
 0x121   :  { %1235 = vst.msk [vmem:[#allocation5 + $0x118] sm:$0xff] %vm1199_vm0, %v1193_v16  ;;  %2183 = vst.msk [vmem:[#allocation5 + $0x240] sm:$0xff] %vm1199_vm0, %v1193_v16  ;;  %v3037_v17 = vrot.slane %v1404_v43, %v3406_v26  ;;  %v1420_v33 = vcombine.high %v1404_v43, %v1404_v43  ;;  %v1445_v35 = vrot.slane %v1430_v36, %v2458_v7 }
 0x122   :  { %2184 = vst.msk [vmem:[#allocation5 + $0x248] sm:$0xff] %vm1199_vm0, %v1193_v16  ;;  %2185 = vst.msk [vmem:[#allocation5 + $0x250] sm:$0xff] %vm1199_vm0, %v1193_v16  ;;  %1311 = vrot.lane.b32.xlu1 %v1002_v3, %s2419_s2  ;;  %1309 = vrot.lane.b32.xlu0 %v1001_v25, %s2419_s2  ;;  %v1459_v32 = vrot.slane %v1438_v10, %v2458_v7  ;;  %v3044_v21 = vrot.slane %v1422_v53, %v3406_v26 }
 0x123   :  { %1218 = vst.msk [vmem:[#allocation5 + $0x90] sm:$0xff] %vm1199_vm0, %v1173_v47  ;;  %1219 = vst.msk [vmem:[#allocation5 + $0x98] sm:$0xff] %vm1199_vm0, %v1173_v47  ;;  %v3047_v1 = vrot.slane %v1420_v33, %v3406_v26  ;;  %v1423_v40 = vcombine.high %v1371_v31, %v1371_v31  ;;  %v1500_v16 = vrot.slane %v1445_v35, %v3406_v26 }
 0x124   :  { %1220 = vst.msk [vmem:[#allocation5 + $0xa0] sm:$0xff] %vm1199_vm0, %v1173_v47  ;;  %2168 = vst.msk [vmem:[#allocation5 + $0x1c8] sm:$0xff] %vm1199_vm0, %v1173_v47  ;;  %v1189_v5 = vpop.permute.xlu1 %1188  ;;  %v1504_v27 = vrot.slane %v1459_v32, %v3406_v26  ;;  %v1460_v41 = vcombine.high %v1445_v35, %v1445_v35  ;;  %v1461_v61 = vcombine.high %v1459_v32, %v1459_v32 }
 0x125   :  { %2169 = vst.msk [vmem:[#allocation5 + $0x1d0] sm:$0xff] %vm1199_vm0, %v1173_v47  ;;  %2170 = vst.msk [vmem:[#allocation5 + $0x1d8] sm:$0xff] %vm1199_vm0, %v1173_v47  ;;  %v1437_v24 = vrot.slane %v1423_v40, %v2458_v7  ;;  %v1681_v18 = vrot.slane %v1622_v44, %v2458_v7  ;;  %v1674_v6 = vcombine.high %v1622_v44, %v1622_v44 }
 0x126   :  { %1224 = vst.msk [vmem:[#allocation5 + $0xc0] sm:$0xff] %vm1199_vm0, %v1181_v63  ;;  %1225 = vst.msk [vmem:[#allocation5 + $0xc8] sm:$0xff] %vm1199_vm0, %v1181_v63  ;;  %1315 = vrot.lane.b32.xlu1 %v1004_v0, %s2419_s2  ;;  %1313 = vrot.lane.b32.xlu0 %v1003_v50, %s2419_s2  ;;  %v1512_v49 = vrot.slane %v1461_v61, %v3406_v26  ;;  %v1508_v60 = vrot.slane %v1460_v41, %v3406_v26  ;;  %v1873_v50 = vld [vmem:[%s3386_s1 + $0x8] sm:$0x1f]  ;;  %s2420_s1 = smov [#allocation5]  }
 0x127   :  { %1226 = vst.msk [vmem:[#allocation5 + $0xd0] sm:$0xff] %vm1199_vm0, %v1181_v63  ;;  %2174 = vst.msk [vmem:[#allocation5 + $0x1f8] sm:$0xff] %vm1199_vm0, %v1181_v63  ;;  %v1452_v30 = vrot.slane %v1437_v24, %v2458_v7  ;;  %v1689_v22 = vcombine.high %v1681_v18, %v1681_v18  ;;  %v1696_v47 = vrot.slane %v1681_v18, %v2458_v7  ;;  %s2324_s18 = sshll.u32 %s2420_s1, 4  ;;  %s2325_s18 = int_to_ptr.vmem [resolvable:$true] %s2324_s18 }
 0x128   :  { %2175 = vst.msk [vmem:[#allocation5 + $0x200] sm:$0xff] %vm1199_vm0, %v1181_v63  ;;  %2176 = vst.msk [vmem:[#allocation5 + $0x208] sm:$0xff] %vm1199_vm0, %v1181_v63  ;;  %v1197_v20 = vpop.permute.xlu1 %1196  ;;  %v1688_v62 = vrot.slane %v1674_v6, %v2458_v7  ;;  %v1932_v14 = vrot.slane %v1873_v50, %v2458_v7  ;;  %v1925_v13 = vcombine.high %v1873_v50, %v1873_v50  ;;  %s2386_s19 = scalar_lea.vmem %s2325_s18, 9984  ;;  %p2391_p9 = scmp.lt.s32.totalorder %s2325_s18, %s2325_s18 }
 0x129   :  { %1230 = vst.msk [vmem:[#allocation5 + $0xf0] sm:$0xff] %vm1199_vm0, %v1189_v5  ;;  %1231 = vst.msk [vmem:[#allocation5 + $0xf8] sm:$0xff] %vm1199_vm0, %v1189_v5  ;;  %v1516_v45 = vrot.slane %v1452_v30, %v3406_v26  ;;  %v1710_v39 = vrot.slane %v1689_v22, %v2458_v7  ;;  %v1751_v3 = vrot.slane %v1696_v47, %v3406_v26  ;;  %p2387_p8 = scmp.ne.s32.totalorder %s2325_s18, %s2386_s19  ;;  %p2392_p10 = scmp.lt.s32.totalorder %s2386_s19, %s2386_s19 }
 0x12a   :  { %1232 = vst.msk [vmem:[#allocation5 + $0x100] sm:$0xff] %vm1199_vm0, %v1189_v5  ;;  %2180 = vst.msk [vmem:[#allocation5 + $0x228] sm:$0xff] %vm1199_vm0, %v1189_v5  ;;  %1522 = vperm.xlu1 %2351, %v2998_v52   ;;  %1518 = vperm.xlu0 %2350, %v3009_v9   ;;  %v1711_v25 = vcombine.high %v1696_v47, %v1696_v47  ;;  %v1703_v42 = vrot.slane %v1688_v62, %v2458_v7 }
 0x12b   :  { %2181 = vst.msk [vmem:[#allocation5 + $0x230] sm:$0xff] %vm1199_vm0, %v1189_v5  ;;  %2182 = vst.msk [vmem:[#allocation5 + $0x238] sm:$0xff] %vm1199_vm0, %v1189_v5  ;;  %v1755_v37 = vrot.slane %v1710_v39, %v3406_v26  ;;  %v1712_v8 = vcombine.high %v1710_v39, %v1710_v39  ;;  %v3408_v5 = vmov 2   ;;  %v1947_v48 = vrot.slane %v1932_v14, %v2458_v7  ;;  %p2393_p11 = por %p2392_p10, %p2391_p9 }
 0x12c   :  { %1236 = vst.msk [vmem:[#allocation5 + $0x120] sm:$0xff] %vm1199_vm0, %v1197_v20  ;;  %1237 = vst.msk [vmem:[#allocation5 + $0x128] sm:$0xff] %vm1199_vm0, %v1197_v20  ;;  %v1759_v63 = vrot.slane %v1711_v25, %v3406_v26  ;;  %v1767_v0 = vrot.slane %v1703_v42, %v3406_v26  ;;  %v1940_v34 = vcombine.high %v1932_v14, %v1932_v14 }
 0x12d   :  { %1238 = vst.msk [vmem:[#allocation5 + $0x130] sm:$0xff] %vm1199_vm0, %v1197_v20  ;;  %2186 = vst.msk [vmem:[#allocation5 + $0x258] sm:$0xff] %vm1199_vm0, %v1197_v20  ;;  %v1763_v56 = vrot.slane %v1712_v8, %v3406_v26  ;;  %v2002_v31 = vrot.slane %v1947_v48, %v3406_v26  ;;  %v1939_v36 = vrot.slane %v1925_v13, %v2458_v7  ;;  %p2394_p12 = pnand %p2393_p11, %p2387_p8 }
 0x12e   :  { %2187 = vst.msk [vmem:[#allocation5 + $0x260] sm:$0xff] %vm1199_vm0, %v1197_v20  ;;  %2188 = vst.msk [vmem:[#allocation5 + $0x268] sm:$0xff] %vm1199_vm0, %v1197_v20  ;;  %1530 = vperm.xlu1 %2351, %v3025_v4   ;;  %1526 = vperm.xlu0 %2350, %v3028_v29   ;;  %v1962_v20 = vcombine.high %v1947_v48, %v1947_v48  ;;  %v1961_v43 = vrot.slane %v1940_v34, %v2458_v7 }
 0x12f   :  { %v1954_v10 = vrot.slane %v1939_v36, %v2458_v7 }
 0x130   :  { %v1963_v33 = vcombine.high %v1961_v43, %v1961_v43 }
 0x131   :  { %v2018_v53 = vrot.slane %v1954_v10, %v3406_v26  ;;  %v3166_v10 = vld [vmem:[#allocation2 + $0x40] sm:$0xff] }
 0x132   :  { %1538 = vperm.xlu1 %2351, %v3032_v46   ;;  %1534 = vperm.xlu0 %2350, %v3037_v17   ;;  %v2014_v35 = vrot.slane %v1963_v33, %v3406_v26 }
 0x136   :  { %1546 = vperm.xlu1 %2351, %v3044_v21   ;;  %1542 = vperm.xlu0 %2350, %v3047_v1  }
 0x13a   :  { %1554 = vperm.xlu1 %2351, %v1504_v27   ;;  %1550 = vperm.xlu0 %2350, %v1500_v16  }
 0x13e   :  { %1562 = vperm.xlu1 %2351, %v1512_v49   ;;  %1558 = vperm.xlu0 %2350, %v1508_v60  }
 0x142   :  { %2352 = vset.pattern.permute.xlu1 %v3407_v28  ;;  %1566 = vperm.xlu0 %2350, %v1516_v45  }
 0x143   :  { %1769 = vperm.xlu1 %2352, %v3009_v9  }
 0x146   :  { %2353 = vset.pattern.permute.xlu0 %v3407_v28 }
 0x147   :  { %1777 = vperm.xlu1 %2352, %v3028_v29   ;;  %1773 = vperm.xlu0 %2353, %v2998_v52  }
 0x14b   :  { %1781 = vperm.xlu1 %2352, %v3025_v4   ;;  %1785 = vperm.xlu0 %2353, %v3037_v17  }
 0x14e   :  { %v1268_v23 = vpop.permute.xlu1 %1267  ;;  %v1266_v2 = vpop.permute.xlu0 %1265 }
 0x14f   :  { %1345 = vst.msk [vmem:[#allocation5 + $0xc] sm:$0xff] %vm1343_vm1, %v1268_v23  ;;  %1344 = vst.msk [vmem:[#allocation5 + $0x4] sm:$0xff] %vm1343_vm1, %v1266_v2  ;;  %1789 = vperm.xlu1 %2352, %v3032_v46   ;;  %1793 = vperm.xlu0 %2353, %v3047_v1  }
 0x153   :  { %1797 = vperm.xlu1 %2352, %v3044_v21   ;;  %1801 = vperm.xlu0 %2353, %v1751_v3  }
 0x157   :  { %1805 = vperm.xlu1 %2352, %v1755_v37   ;;  %1809 = vperm.xlu0 %2353, %v1759_v63  }
 0x15b   :  { %1813 = vperm.xlu1 %2352, %v1763_v56   ;;  %1817 = vperm.xlu0 %2353, %v1767_v0  }
 0x15f   :  { %2354 = vset.pattern.permute.xlu1 %v3408_v5  ;;  %2355 = vset.pattern.permute.xlu0 %v3408_v5 }
 0x160   :  { %2020 = vperm.xlu1 %2354, %v3009_v9   ;;  %2024 = vperm.xlu0 %2355, %v2998_v52  }
 0x164   :  { %2028 = vperm.xlu1 %2354, %v3028_v29   ;;  %2036 = vperm.xlu0 %2355, %v3037_v17   ;;  %v2010_v29 = vrot.slane %v1962_v20, %v3406_v26 }
 0x168   :  { %2032 = vperm.xlu1 %2354, %v3025_v4   ;;  %2044 = vperm.xlu0 %2355, %v3047_v1  }
 0x16c   :  { %2040 = vperm.xlu1 %2354, %v3032_v46   ;;  %v1272_v52 = vpop.permute.xlu1 %1271  ;;  %2052 = vperm.xlu0 %2355, %v2002_v31   ;;  %v1270_v9 = vpop.permute.xlu0 %1269  ;;  %v2006_v46 = vrot.slane %v1961_v43, %v3406_v26  ;;  %v3164_v43 = vld [vmem:[#allocation2 + $0x38] sm:$0xff] }
 0x16d   :  { %1347 = vst.msk [vmem:[#allocation5 + $0x24] sm:$0xff] %vm1343_vm1, %v1272_v52  ;;  %1346 = vst.msk [vmem:[#allocation5 + $0x1c] sm:$0xff] %vm1343_vm1, %v1270_v9  ;;  %v3158_v52 = vld [vmem:[#allocation2 + $0x30] sm:$0xff] }
 0x170   :  { %2048 = vperm.xlu1 %2354, %v3044_v21   ;;  %v1276_v4 = vpop.permute.xlu1 %1275  ;;  %2060 = vperm.xlu0 %2355, %v2010_v29   ;;  %v1274_v17 = vpop.permute.xlu0 %1273 }
 0x171   :  { %1349 = vst.msk [vmem:[#allocation5 + $0x3c] sm:$0xff] %vm1343_vm1, %v1276_v4  ;;  %1348 = vst.msk [vmem:[#allocation5 + $0x34] sm:$0xff] %vm1343_vm1, %v1274_v17  ;;  %v3169_v17 = vld [vmem:[#allocation2 + $0x48] sm:$0xff] }
 0x174   :  { %2056 = vperm.xlu1 %2354, %v2006_v46   ;;  %v1284_v7 = vpop.permute.xlu1 %1283  ;;  %2068 = vperm.xlu0 %2355, %v2018_v53   ;;  %v1282_v32 = vpop.permute.xlu0 %1281 }
 0x175   :  { %1353 = vst.msk [vmem:[#allocation5 + $0x6c] sm:$0xff] %vm1343_vm1, %v1284_v7  ;;  %1352 = vst.msk [vmem:[#allocation5 + $0x64] sm:$0xff] %vm1343_vm1, %v1282_v32 }
 0x178   :  { %2064 = vperm.xlu1 %2354, %v2014_v35   ;;  %v1280_v21 = vpop.permute.xlu1 %1279  ;;  %v1278_v1 = vpop.permute.xlu0 %1277 }
 0x179   :  { %1351 = vst.msk [vmem:[#allocation5 + $0x54] sm:$0xff] %vm1343_vm1, %v1280_v21  ;;  %1350 = vst.msk [vmem:[#allocation5 + $0x4c] sm:$0xff] %vm1343_vm1, %v1278_v1  ;;  %v3409_v1 = vld [vmem:[#allocation9_spill] sm:$0xff] }
 0x17c   :  { %v1288_v40 = vpop.permute.xlu1 %1287  ;;  %v1286_v27 = vpop.permute.xlu0 %1285 }
 0x17d   :  { %1355 = vst.msk [vmem:[#allocation5 + $0x84] sm:$0xff] %vm1343_vm1, %v1288_v40  ;;  %1354 = vst.msk [vmem:[#allocation5 + $0x7c] sm:$0xff] %vm1343_vm1, %v1286_v27  ;;  %v3181_v27 = vld [vmem:[#allocation2 + $0x50] sm:$0xff] }
 0x180   :  { %v1292_v16 = vpop.permute.xlu1 %1291  ;;  %v1290_v41 = vpop.permute.xlu0 %1289 }
 0x181   :  { %1357 = vst.msk [vmem:[#allocation5 + $0x9c] sm:$0xff] %vm1343_vm1, %v1292_v16  ;;  %1356 = vst.msk [vmem:[#allocation5 + $0x94] sm:$0xff] %vm1343_vm1, %v1290_v41  ;;  %v3183_v16 = vld [vmem:[#allocation2 + $0x58] sm:$0xff] }
 0x184   :  { %v1296_v26 = vpop.permute.xlu1 %1295  ;;  %v1294_v61 = vpop.permute.xlu0 %1293 }
 0x185   :  { %1359 = vst.msk [vmem:[#allocation5 + $0xb4] sm:$0xff] %vm1343_vm1, %v1296_v26  ;;  %1358 = vst.msk [vmem:[#allocation5 + $0xac] sm:$0xff] %vm1343_vm1, %v1294_v61  ;;  %v3410_v61 = vld [vmem:[#allocation11_spill] sm:$0xff] }
 0x188   :  { %v1300_v24 = vpop.permute.xlu1 %1299  ;;  %v1298_v49 = vpop.permute.xlu0 %1297 }
 0x189   :  { %1361 = vst.msk [vmem:[#allocation5 + $0xcc] sm:$0xff] %vm1343_vm1, %v1300_v24  ;;  %1360 = vst.msk [vmem:[#allocation5 + $0xc4] sm:$0xff] %vm1343_vm1, %v1298_v49 }
 0x18c   :  { %v1304_v60 = vpop.permute.xlu1 %1303  ;;  %v1302_v30 = vpop.permute.xlu0 %1301 }
 0x18d   :  { %1363 = vst.msk [vmem:[#allocation5 + $0xe4] sm:$0xff] %vm1343_vm1, %v1304_v60  ;;  %1362 = vst.msk [vmem:[#allocation5 + $0xdc] sm:$0xff] %vm1343_vm1, %v1302_v30 }
 0x190   :  { %v1308_v45 = vpop.permute.xlu1 %1307  ;;  %v1306_v28 = vpop.permute.xlu0 %1305 }
 0x191   :  { %1365 = vst.msk [vmem:[#allocation5 + $0xfc] sm:$0xff] %vm1343_vm1, %v1308_v45  ;;  %1364 = vst.msk [vmem:[#allocation5 + $0xf4] sm:$0xff] %vm1343_vm1, %v1306_v28 }
 0x194   :  { %v1312_v44 = vpop.permute.xlu1 %1311  ;;  %v1310_v18 = vpop.permute.xlu0 %1309 }
 0x195   :  { %1367 = vst.msk [vmem:[#allocation5 + $0x114] sm:$0xff] %vm1343_vm1, %v1312_v44  ;;  %1366 = vst.msk [vmem:[#allocation5 + $0x10c] sm:$0xff] %vm1343_vm1, %v1310_v18 }
 0x198   :  { %v1316_v22 = vpop.permute.xlu1 %1315  ;;  %v1314_v47 = vpop.permute.xlu0 %1313 }
 0x199   :  { %1369 = vst.msk [vmem:[#allocation5 + $0x12c] sm:$0xff] %vm1343_vm1, %v1316_v22  ;;  %1368 = vst.msk [vmem:[#allocation5 + $0x124] sm:$0xff] %vm1343_vm1, %v1314_v47 }
 0x1a9   :  { %v1523_v6 = vpop.permute.xlu1 %1522  ;;  %v1519_v23 = vpop.permute.xlu0 %1518 }
 0x1aa   :  { %v1569_v4 = vmul.f32 %v1519_v23, %v3158_v52  ;;  %v1570_v46 = vmul.f32 %v1519_v23, %v3164_v43  ;;  %v1572_v7 = vmul.f32 %v1523_v6, %v3164_v43  ;;  %v1571_v21 = vmul.f32 %v1523_v6, %v3158_v52 }
 0x1ac   :  { %v1595_v40 = vadd.f32 %v1569_v4, %v3409_v1  ;;  %v1596_v41 = vadd.f32 %v1570_v46, %v3409_v1  ;;  %v1598_v24 = vadd.f32 %v1572_v7, %v3410_v61  ;;  %v1597_v6 = vadd.f32 %v1571_v21, %v3410_v61 }
 0x1ad   :  { %v1531_v2 = vpop.permute.xlu1 %1530  ;;  %v1527_v39 = vpop.permute.xlu0 %1526 }
 0x1ae   :  { %v1574_v49 = vmul.f32 %v1527_v39, %v3164_v43  ;;  %v1573_v23 = vmul.f32 %v1527_v39, %v3158_v52 }
 0x1b1   :  { %v3130_v3 = vpop.permute.xlu1 %1538  ;;  %v3132_v25 = vpop.permute.xlu0 %1534 }
 0x1b5   :  { %v3134_v62 = vpop.permute.xlu1 %1546  ;;  %v3136_v37 = vpop.permute.xlu0 %1542 }
 0x1b9   :  { %v3138_v63 = vpop.permute.xlu1 %1554  ;;  %v3140_v8 = vpop.permute.xlu0 %1550 }
 0x1bd   :  { %v3142_v42 = vpop.permute.xlu1 %1562  ;;  %v3144_v56 = vpop.permute.xlu0 %1558 }
 0x1c1   :  { %v3146_v0 = vpop.permute.xlu0 %1566 }
 0x1c2   :  { %v1770_v50 = vpop.permute.xlu1 %1769 }
 0x1c3   :  { %v1820_v32 = vmul.f32 %v1770_v50, %v3166_v10  ;;  %v1821_v35 = vmul.f32 %v1770_v50, %v3169_v17 }
 0x1c5   :  { %v1846_v60 = vadd.f32 %v1820_v32, %v1595_v40  ;;  %v1847_v44 = vadd.f32 %v1821_v35, %v1596_v41  ;;  %v1575_v32 = vmul.f32 %v1531_v2, %v3158_v52  ;;  %v1576_v35 = vmul.f32 %v1531_v2, %v3164_v43 }
 0x1c6   :  { %v1778_v5 = vpop.permute.xlu1 %1777  ;;  %v1774_v14 = vpop.permute.xlu0 %1773 }
 0x1c7   :  { %v1823_v26 = vmul.f32 %v1774_v14, %v3169_v17  ;;  %v1822_v30 = vmul.f32 %v1774_v14, %v3166_v10  ;;  %v1825_v4 = vmul.f32 %v1778_v5, %v3169_v17  ;;  %v1824_v1 = vmul.f32 %v1778_v5, %v3166_v10 }
 0x1c8   :  { %v1601_v2 = vadd.f32 %v1575_v32, %v2751_v11  ;;  %v1602_v5 = vadd.f32 %v1576_v35, %v2751_v11  ;;  %v1580_v32 = vmul.f32 %v3130_v3, %v3164_v43 }
 0x1c9   :  { %v1849_v46 = vadd.f32 %v1823_v26, %v1598_v24  ;;  %v1848_v40 = vadd.f32 %v1822_v30, %v1597_v6 }
 0x1ca   :  { %v1782_v48 = vpop.permute.xlu1 %1781  ;;  %v3148_v13 = vpop.permute.xlu0 %1785 }
 0x1cb   :  { %v1826_v30 = vmul.f32 %v1782_v48, %v3166_v10 }
 0x1cd   :  { %v1852_v35 = vadd.f32 %v1826_v30, %v1601_v2  ;;  %v1581_v30 = vmul.f32 %v3136_v37, %v3158_v52 }
 0x1ce   :  { %v3150_v31 = vpop.permute.xlu1 %1789  ;;  %v3152_v20 = vpop.permute.xlu0 %1793 }
 0x1d2   :  { %v3154_v34 = vpop.permute.xlu1 %1797  ;;  %v3156_v36 = vpop.permute.xlu0 %1801 }
 0x1d6   :  { %v3160_v9 = vpop.permute.xlu1 %1805  ;;  %v3162_v29 = vpop.permute.xlu0 %1809 }
 0x1da   :  { %v3172_v53 = vpop.permute.xlu1 %1813  ;;  %v3174_v33 = vpop.permute.xlu0 %1817 }
 0x1df   :  { %v2021_v45 = vpop.permute.xlu1 %2020  ;;  %v2025_v28 = vpop.permute.xlu0 %2024 }
 0x1e0   :  { %v2071_v18 = vmul.f32 %v2021_v45, %v3181_v27  ;;  %v2072_v22 = vmul.f32 %v2021_v45, %v3183_v16  ;;  %v2074_v47 = vmul.f32 %v2025_v28, %v3183_v16  ;;  %v2073_v50 = vmul.f32 %v2025_v28, %v3181_v27 }
 0x1e1   :  { %v1600_v45 = vadd.f32 %v1574_v49, %v2680_v51  ;;  %v1599_v28 = vadd.f32 %v1573_v23, %v2680_v51  ;;  %v1577_v23 = vmul.f32 %v3132_v25, %v3158_v52 }
 0x1e2   :  { %v2097_v7 = vadd.f32 %v2071_v18, %v1846_v60  ;;  %v2098_v14 = vadd.f32 %v2072_v22, %v1847_v44  ;;  %v2100_v39 = vadd.f32 %v2074_v47, %v1849_v46  ;;  %v2099_v59 = vadd.f32 %v2073_v50, %v1848_v40 }
 0x1e3   :  { %v2029_v41 = vpop.permute.xlu1 %2028  ;;  %v1851_v60 = vadd.f32 %v1825_v4, %v1600_v45  ;;  %v1827_v44 = vmul.f32 %v1782_v48, %v3169_v17  ;;  %v1850_v49 = vadd.f32 %v1824_v1, %v1599_v28  ;;  %v1578_v18 = vmul.f32 %v3132_v25, %v3164_v43  ;;  %v2037_v46 = vpop.permute.xlu0 %2036 }
 0x1e4   :  { %v2123_v21 = vmin.f32 %v2097_v7, 21.0  ;;  %v2124_v61 = vmin.f32 %v2098_v14, 21.0  ;;  %v2075_v26 = vmul.f32 %v2029_v41, %v3181_v27  ;;  %v2076_v24 = vmul.f32 %v2029_v41, %v3183_v16 }
 0x1e5   :  { %v2126_v22 = vmin.f32 %v2100_v39, 21.0  ;;  %v2125_v50 = vmin.f32 %v2099_v59, 21.0  ;;  %v1853_v11 = vadd.f32 %v1827_v44, %v1602_v5  ;;  %v1829_v48 = vmul.f32 %v3148_v13, %v3169_v17 }
 0x1e6   :  { %2217 = vrot.lane.b32.xlu0 %v2124_v61, %s2419_s2  ;;  %2215 = vrot.lane.b32.xlu1 %v2123_v21, %s2419_s2  ;;  %v2102_v47 = vadd.f32 %v2076_v24, %v1851_v60  ;;  %v2101_v4 = vadd.f32 %v2075_v26, %v1850_v49  ;;  %v1579_v14 = vmul.f32 %v3130_v3, %v3158_v52 }
 0x1e7   :  { %v2033_v51 = vpop.permute.xlu1 %2032  ;;  %v1828_v59 = vmul.f32 %v3148_v13, %v3166_v10  ;;  %v1604_v25 = vadd.f32 %v1578_v18, %v2684_v54  ;;  %v2080_v40 = vmul.f32 %v2037_v46, %v3183_v16  ;;  %v1603_v45 = vadd.f32 %v1577_v23, %v2684_v54 }
 0x1e8   :  { %v2078_v6 = vmul.f32 %v2033_v51, %v3183_v16  ;;  %v2077_v7 = vmul.f32 %v2033_v51, %v3181_v27  ;;  %v2128_v1 = vmin.f32 %v2102_v47, 21.0  ;;  %v2127_v21 = vmin.f32 %v2101_v4, 21.0 }
 0x1e9   :  { %v2079_v61 = vmul.f32 %v2037_v46, %v3181_v27  ;;  %v1855_v3 = vadd.f32 %v1829_v48, %v1604_v25  ;;  %v1831_v26 = vmul.f32 %v3150_v31, %v3169_v17  ;;  %v1605_v13 = vadd.f32 %v1579_v14, %v2770_v38 }
 0x1ea   :  { %2221 = vrot.lane.b32.xlu0 %v2126_v22, %s2419_s2  ;;  %2219 = vrot.lane.b32.xlu1 %v2125_v50, %s2419_s2  ;;  %v2104_v41 = vadd.f32 %v2078_v6, %v1853_v11  ;;  %v2103_v39 = vadd.f32 %v2077_v7, %v1852_v35  ;;  %v1606_v24 = vadd.f32 %v1580_v32, %v2770_v38  ;;  %v2045_v22 = vpop.permute.xlu0 %2044 }
 0x1eb   :  { %v2041_v28 = vpop.permute.xlu1 %2040  ;;  %v1854_v60 = vadd.f32 %v1828_v59, %v1603_v45  ;;  %v1830_v44 = vmul.f32 %v3150_v31, %v3166_v10  ;;  %v1582_v54 = vmul.f32 %v3136_v37, %v3164_v43  ;;  %v2106_v2 = vadd.f32 %v2080_v40, %v1855_v3 }
 0x1ec   :  { %v2130_v5 = vmin.f32 %v2104_v41, 21.0  ;;  %v2082_v49 = vmul.f32 %v2041_v28, %v3183_v16  ;;  %v2129_v18 = vmin.f32 %v2103_v39, 21.0  ;;  %v2081_v38 = vmul.f32 %v2041_v28, %v3181_v27 }
 0x1ed   :  { %v2105_v51 = vadd.f32 %v2079_v61, %v1854_v60  ;;  %v1857_v47 = vadd.f32 %v1831_v26, %v1606_v24  ;;  %v1833_v31 = vmul.f32 %v3152_v20, %v3169_v17  ;;  %v1583_v6 = vmul.f32 %v3134_v62, %v3158_v52 }
 0x1ee   :  { %2225 = vrot.lane.b32.xlu0 %v2128_v1, %s2419_s2  ;;  %2223 = vrot.lane.b32.xlu1 %v2127_v21, %s2419_s2  ;;  %v1584_v23 = vmul.f32 %v3134_v62, %v3164_v43  ;;  %v1856_v50 = vadd.f32 %v1830_v44, %v1605_v13  ;;  %v1832_v37 = vmul.f32 %v3152_v20, %v3166_v10  ;;  %v2132_v46 = vmin.f32 %v2106_v2, 21.0  ;;  %v2053_v26 = vpop.permute.xlu0 %2052 }
 0x1ef   :  { %v1608_v4 = vadd.f32 %v1582_v54, %v2688_v55  ;;  %v2084_v7 = vmul.f32 %v2045_v22, %v3183_v16  ;;  %v2108_v11 = vadd.f32 %v2082_v49, %v1857_v47  ;;  %v1607_v48 = vadd.f32 %v1581_v30, %v2688_v55  ;;  %v2049_v59 = vpop.permute.xlu1 %2048 }
 0x1f0   :  { %v2131_v14 = vmin.f32 %v2105_v51, 21.0  ;;  %v2083_v32 = vmul.f32 %v2045_v22, %v3181_v27  ;;  %v2107_v35 = vadd.f32 %v2081_v38, %v1856_v50  ;;  %v1835_v25 = vmul.f32 %v3154_v34, %v3169_v17 }
 0x1f1   :  { %v1859_v62 = vadd.f32 %v1833_v31, %v1608_v4  ;;  %v1609_v20 = vadd.f32 %v1583_v6, %v2784_v15  ;;  %v1610_v1 = vadd.f32 %v1584_v23, %v2784_v15  ;;  %v1858_v40 = vadd.f32 %v1832_v37, %v1607_v48 }
 0x1f2   :  { %2229 = vrot.lane.b32.xlu0 %v2130_v5, %s2419_s2  ;;  %2227 = vrot.lane.b32.xlu1 %v2129_v18, %s2419_s2  ;;  %v1834_v41 = vmul.f32 %v3154_v34, %v3166_v10  ;;  %v1586_v55 = vmul.f32 %v3140_v8, %v3164_v43  ;;  %v2134_v21 = vmin.f32 %v2108_v11, 21.0  ;;  %v2086_v61 = vmul.f32 %v2049_v59, %v3183_v16  ;;  %v2061_v48 = vpop.permute.xlu0 %2060 }
 0x1f3   :  { %v2110_v45 = vadd.f32 %v2084_v7, %v1859_v62  ;;  %v1585_v39 = vmul.f32 %v3140_v8, %v3158_v52  ;;  %v2109_v28 = vadd.f32 %v2083_v32, %v1858_v40  ;;  %v2133_v3 = vmin.f32 %v2107_v35, 21.0  ;;  %v2057_v38 = vpop.permute.xlu1 %2056 }
 0x1f4   :  { %v2085_v15 = vmul.f32 %v2049_v59, %v3181_v27  ;;  %v1861_v13 = vadd.f32 %v1835_v25, %v1610_v1  ;;  %v1837_v34 = vmul.f32 %v3156_v36, %v3169_v17  ;;  %v1587_v24 = vmul.f32 %v3138_v63, %v3158_v52 }
 0x1f5   :  { %v1588_v60 = vmul.f32 %v3138_v63, %v3164_v43  ;;  %v1860_v44 = vadd.f32 %v1834_v41, %v1609_v20  ;;  %v1836_v8 = vmul.f32 %v3156_v36, %v3166_v10  ;;  %v1612_v54 = vadd.f32 %v1586_v55, %v2692_v57 }
 0x1f6   :  { %2233 = vrot.lane.b32.xlu0 %v2132_v46, %s2419_s2  ;;  %2231 = vrot.lane.b32.xlu1 %v2131_v14, %s2419_s2  ;;  %v2136_v2 = vmin.f32 %v2110_v45, 21.0  ;;  %v2088_v5 = vmul.f32 %v2053_v26, %v3183_v16  ;;  %v2112_v49 = vadd.f32 %v2086_v61, %v1861_v13  ;;  %v1611_v30 = vadd.f32 %v1585_v39, %v2692_v57 }
 0x1f7   :  { %v2135_v51 = vmin.f32 %v2109_v28, 21.0  ;;  %v2087_v18 = vmul.f32 %v2053_v26, %v3181_v27  ;;  %v2111_v22 = vadd.f32 %v2085_v15, %v1860_v44  ;;  %v1863_v63 = vadd.f32 %v1837_v34, %v1612_v54  ;;  %v2069_v44 = vpop.permute.xlu0 %2068 }
 0x1f8   :  { %v1839_v47 = vmul.f32 %v3160_v9, %v3169_v17  ;;  %v1613_v36 = vadd.f32 %v1587_v24, %v2800_v12  ;;  %v1614_v31 = vadd.f32 %v1588_v60, %v2800_v12  ;;  %v1862_v6 = vadd.f32 %v1836_v8, %v1611_v30 }
 0x1f9   :  { %v1838_v23 = vmul.f32 %v3160_v9, %v3166_v10  ;;  %v1590_v57 = vmul.f32 %v3144_v56, %v3164_v43  ;;  %v2114_v50 = vadd.f32 %v2088_v5, %v1863_v63  ;;  %v2138_v37 = vmin.f32 %v2112_v49, 21.0 }
 0x1fa   :  { %2237 = vrot.lane.b32.xlu0 %v2134_v21, %s2419_s2  ;;  %2235 = vrot.lane.b32.xlu1 %v2133_v3, %s2419_s2  ;;  %v2090_v4 = vmul.f32 %v2057_v38, %v3183_v16  ;;  %v1589_v46 = vmul.f32 %v3144_v56, %v3158_v52  ;;  %v2113_v7 = vadd.f32 %v2087_v18, %v1862_v6  ;;  %v2137_v11 = vmin.f32 %v2111_v22, 21.0  ;;  %v2065_v21 = vpop.permute.xlu1 %2064 }
 0x1fb   :  { %v2089_v12 = vmul.f32 %v2057_v38, %v3181_v27  ;;  %v1865_v14 = vadd.f32 %v1839_v47, %v1614_v31  ;;  %v1841_v9 = vmul.f32 %v3162_v29, %v3169_v17  ;;  %v1591_v32 = vmul.f32 %v3142_v42, %v3158_v52 }
 0x1fc   :  { %v1592_v35 = vmul.f32 %v3142_v42, %v3164_v43  ;;  %v1864_v59 = vadd.f32 %v1838_v23, %v1613_v36  ;;  %v1840_v56 = vmul.f32 %v3162_v29, %v3166_v10  ;;  %v1616_v62 = vadd.f32 %v1590_v57, %v2696_v58 }
 0x1fd   :  { %v2140_v25 = vmin.f32 %v2114_v50, 21.0  ;;  %v2092_v20 = vmul.f32 %v2061_v48, %v3183_v16  ;;  %v2116_v1 = vadd.f32 %v2090_v4, %v1865_v14  ;;  %v1615_v40 = vadd.f32 %v1589_v46, %v2696_v58 }
 0x1fe   :  { %2241 = vrot.lane.b32.xlu0 %v2136_v2, %s2419_s2  ;;  %2239 = vrot.lane.b32.xlu1 %v2135_v51, %s2419_s2  ;;  %v2139_v41 = vmin.f32 %v2113_v7, 21.0  ;;  %v2091_v55 = vmul.f32 %v2061_v48, %v3181_v27  ;;  %v2115_v45 = vadd.f32 %v2089_v12, %v1864_v59  ;;  %v1867_v42 = vadd.f32 %v1841_v9, %v1616_v62  ;;  %v3411_v2 = vld [vmem:[#allocation10_spill] sm:$0xff] }
 0x1ff   :  { %v1843_v61 = vmul.f32 %v3172_v53, %v3169_v17  ;;  %v1617_v29 = vadd.f32 %v1591_v32, %v2815_v19  ;;  %v1618_v39 = vadd.f32 %v1592_v35, %v2815_v19  ;;  %v1866_v28 = vadd.f32 %v1840_v56, %v1615_v40 }
 0x200   :  { %v1842_v3 = vmul.f32 %v3172_v53, %v3166_v10  ;;  %v1594_v58 = vmul.f32 %v3146_v0, %v3164_v43  ;;  %v2118_v26 = vadd.f32 %v2092_v20, %v1867_v42  ;;  %v2142_v15 = vmin.f32 %v2116_v1, 21.0 }
 0x201   :  { %v2094_v13 = vmul.f32 %v2065_v21, %v3183_v16  ;;  %v1593_v34 = vmul.f32 %v3146_v0, %v3158_v52  ;;  %v2117_v24 = vadd.f32 %v2091_v55, %v1866_v28  ;;  %v2141_v60 = vmin.f32 %v2115_v45, 21.0 }
 0x202   :  { %2245 = vrot.lane.b32.xlu0 %v2138_v37, %s2419_s2  ;;  %2243 = vrot.lane.b32.xlu1 %v2137_v11, %s2419_s2  ;;  %v2093_v19 = vmul.f32 %v2065_v21, %v3181_v27  ;;  %v1869_v8 = vadd.f32 %v1843_v61, %v1618_v39  ;;  %v1845_v53 = vmul.f32 %v3174_v33, %v3169_v17  ;;  %v2144_v0 = vmin.f32 %v2118_v26, 21.0 }
 0x203   :  { %v1868_v54 = vadd.f32 %v1842_v3, %v1617_v29  ;;  %v1844_v43 = vmul.f32 %v3174_v33, %v3166_v10  ;;  %v1620_v5 = vadd.f32 %v1594_v58, %v3411_v2  ;;  %v2096_v52 = vmul.f32 %v2069_v44, %v3183_v16 }
 0x204   :  { %v2120_v49 = vadd.f32 %v2094_v13, %v1869_v8  ;;  %v1619_v30 = vadd.f32 %v1593_v34, %v3411_v2  ;;  %v2143_v51 = vmin.f32 %v2117_v24, 21.0  ;;  %v2095_v18 = vmul.f32 %v2069_v44, %v3181_v27 }
 0x205   :  { %v2119_v17 = vadd.f32 %v2093_v19, %v1868_v54  ;;  %v1871_v22 = vadd.f32 %v1845_v53, %v1620_v5 }
 0x206   :  { %2249 = vrot.lane.b32.xlu0 %v2140_v25, %s2419_s2  ;;  %2247 = vrot.lane.b32.xlu1 %v2139_v41, %s2419_s2  ;;  %v1870_v38 = vadd.f32 %v1844_v43, %v1619_v30  ;;  %v2146_v33 = vmin.f32 %v2120_v49, 21.0 }
 0x207   :  { %v2122_v10 = vadd.f32 %v2096_v52, %v1871_v22  ;;  %v2145_v47 = vmin.f32 %v2119_v17, 21.0 }
 0x208   :  { %v2121_v63 = vadd.f32 %v2095_v18, %v1870_v38 }
 0x209   :  { %v2148_v16 = vmin.f32 %v2122_v10, 21.0 }
 0x20a   :  { %2253 = vrot.lane.b32.xlu0 %v2142_v15, %s2419_s2  ;;  %2251 = vrot.lane.b32.xlu1 %v2141_v60, %s2419_s2  ;;  %v2147_v36 = vmin.f32 %v2121_v63, 21.0 }
 0x20e   :  { %2257 = vrot.lane.b32.xlu0 %v2144_v0, %s2419_s2  ;;  %2255 = vrot.lane.b32.xlu1 %v2143_v51, %s2419_s2 }
 0x212   :  { %2261 = vrot.lane.b32.xlu0 %v2146_v33, %s2419_s2  ;;  %2259 = vrot.lane.b32.xlu1 %v2145_v47, %s2419_s2 }
 0x216   :  { %2265 = vrot.lane.b32.xlu0 %v2148_v16, %s2419_s2  ;;  %2263 = vrot.lane.b32.xlu1 %v2147_v36, %s2419_s2 }
 0x258   :  { %v2216_v27 = vpop.permute.xlu1 %2215  ;;  %v2218_v31 = vpop.permute.xlu0 %2217 }
 0x259   :  { %2293 = vst.msk [vmem:[#allocation5 + $0x13c] sm:$0xff] %vm1343_vm1, %v2216_v27  ;;  %2294 = vst.msk [vmem:[#allocation5 + $0x144] sm:$0xff] %vm1343_vm1, %v2218_v31 }
 0x25c   :  { %v2222_v6 = vpop.permute.xlu0 %2221  ;;  %v2220_v23 = vpop.permute.xlu1 %2219 }
 0x25d   :  { %2296 = vst.msk [vmem:[#allocation5 + $0x15c] sm:$0xff] %vm1343_vm1, %v2222_v6  ;;  %2295 = vst.msk [vmem:[#allocation5 + $0x154] sm:$0xff] %vm1343_vm1, %v2220_v23 }
 0x260   :  { %v2226_v57 = vpop.permute.xlu0 %2225  ;;  %v2224_v50 = vpop.permute.xlu1 %2223 }
 0x261   :  { %2298 = vst.msk [vmem:[#allocation5 + $0x174] sm:$0xff] %vm1343_vm1, %v2226_v57  ;;  %2297 = vst.msk [vmem:[#allocation5 + $0x16c] sm:$0xff] %vm1343_vm1, %v2224_v50 }
 0x264   :  { %v2230_v37 = vpop.permute.xlu0 %2229  ;;  %v2228_v4 = vpop.permute.xlu1 %2227 }
 0x265   :  { %2300 = vst.msk [vmem:[#allocation5 + $0x18c] sm:$0xff] %vm1343_vm1, %v2230_v37  ;;  %2299 = vst.msk [vmem:[#allocation5 + $0x184] sm:$0xff] %vm1343_vm1, %v2228_v4 }
 0x268   :  { %v2234_v46 = vpop.permute.xlu0 %2233  ;;  %v2232_v7 = vpop.permute.xlu1 %2231 }
 0x269   :  { %2302 = vst.msk [vmem:[#allocation5 + $0x1a4] sm:$0xff] %vm1343_vm1, %v2234_v46  ;;  %2301 = vst.msk [vmem:[#allocation5 + $0x19c] sm:$0xff] %vm1343_vm1, %v2232_v7 }
 0x26c   :  { %v2238_v11 = vpop.permute.xlu0 %2237  ;;  %v2236_v48 = vpop.permute.xlu1 %2235 }
 0x26d   :  { %2304 = vst.msk [vmem:[#allocation5 + $0x1bc] sm:$0xff] %vm1343_vm1, %v2238_v11  ;;  %2303 = vst.msk [vmem:[#allocation5 + $0x1b4] sm:$0xff] %vm1343_vm1, %v2236_v48 }
 0x270   :  { %v2242_v12 = vpop.permute.xlu0 %2241  ;;  %v2240_v14 = vpop.permute.xlu1 %2239 }
 0x271   :  { %2306 = vst.msk [vmem:[#allocation5 + $0x1d4] sm:$0xff] %vm1343_vm1, %v2242_v12  ;;  %2305 = vst.msk [vmem:[#allocation5 + $0x1cc] sm:$0xff] %vm1343_vm1, %v2240_v14 }
 0x274   :  { %v2246_v9 = vpop.permute.xlu0 %2245  ;;  %v2244_v32 = vpop.permute.xlu1 %2243 }
 0x275   :  { %2308 = vst.msk [vmem:[#allocation5 + $0x1ec] sm:$0xff] %vm1343_vm1, %v2246_v9  ;;  %2307 = vst.msk [vmem:[#allocation5 + $0x1e4] sm:$0xff] %vm1343_vm1, %v2244_v32 }
 0x278   :  { %v2250_v35 = vpop.permute.xlu0 %2249  ;;  %v2248_v59 = vpop.permute.xlu1 %2247 }
 0x279   :  { %2310 = vst.msk [vmem:[#allocation5 + $0x204] sm:$0xff] %vm1343_vm1, %v2250_v35  ;;  %2309 = vst.msk [vmem:[#allocation5 + $0x1fc] sm:$0xff] %vm1343_vm1, %v2248_v59 }
 0x27c   :  { %v2254_v56 = vpop.permute.xlu0 %2253  ;;  %v2252_v62 = vpop.permute.xlu1 %2251 }
 0x27d   :  { %2312 = vst.msk [vmem:[#allocation5 + $0x21c] sm:$0xff] %vm1343_vm1, %v2254_v56  ;;  %2311 = vst.msk [vmem:[#allocation5 + $0x214] sm:$0xff] %vm1343_vm1, %v2252_v62 }
 0x280   :  { %v2258_v25 = vpop.permute.xlu0 %2257  ;;  %v2256_v20 = vpop.permute.xlu1 %2255 }
 0x281   :  { %2314 = vst.msk [vmem:[#allocation5 + $0x234] sm:$0xff] %vm1343_vm1, %v2258_v25  ;;  %2313 = vst.msk [vmem:[#allocation5 + $0x22c] sm:$0xff] %vm1343_vm1, %v2256_v20 }
 0x284   :  { %v2262_v1 = vpop.permute.xlu0 %2261  ;;  %v2260_v40 = vpop.permute.xlu1 %2259 }
 0x285   :  { %2316 = vst.msk [vmem:[#allocation5 + $0x24c] sm:$0xff] %vm1343_vm1, %v2262_v1  ;;  %2315 = vst.msk [vmem:[#allocation5 + $0x244] sm:$0xff] %vm1343_vm1, %v2260_v40 }
 0x288   :  { %v2266_v41 = vpop.permute.xlu0 %2265  ;;  %v2264_v55 = vpop.permute.xlu1 %2263 }
 0x289   :  { %2318 = vst.msk [vmem:[#allocation5 + $0x264] sm:$0xff] %vm1343_vm1, %v2266_v41  ;;  %2317 = vst.msk [vmem:[#allocation5 + $0x25c] sm:$0xff] %vm1343_vm1, %v2264_v55 }
 0x28a   :  { %2397 = shalt.err (!%p2394_p12)
}
 0x28b   :  { %s2398_s24 = scalar_lea.hbm %s3388_s3, 9984 }
 0x28c   :  { %p2399_p13 = scmp.ne.s32.totalorder %s3388_s3, %s2398_s24  ;;  %p2402_p0 = scmp.lt.u32.totalorder %s2398_s24, %s3388_s3 }
 0x28e   :  { %p2404_p1 = pnand %p2402_p0, %p2399_p13 }
 0x290   :  { %2407 = shalt.err (!%p2404_p1)
}
 0x291   :  { %2330 = dma.vmem_to_hbm [thread:$0]  %s2325_s18, 9984, %s3388_s3, [#allocation4], %s2413_s22, %s2413_s22, %s2414_s23  }
 0x292   :  { %2410 = dma.done.wait [#allocation4], 9984  }
 0x293   :  { %2411 = vsyncadd [#allocation4], 4294957312 }
 0x294   :  { %2334 = vsyncpa [#allocation3], 1 }
 0x295   :  { %2335 = vsyncpa [#allocation4], 1 }

</bundles_post_ra>
